<compile_context>
chip_gen: v5e
topology: v5e:2x2
jax: 0.10.0
libtpu: 0.0.40
codegen_flags: <defaults>
</compile_context>

<pallas_src>
import jax
import jax.numpy as jnp
import numpy as np
from jax.experimental import pallas as pl
from jax.experimental.pallas import tpu as pltpu

# ----------------------------------------------------------------------------
# Module hyper-parameters (fixed by the hard-coded nn.Linear(74, ...):
# flatten size = 2 * hidden_units * 1 * 1 = 74  =>  hidden_units=37, input 4x4)
# ----------------------------------------------------------------------------
BATCH = 2
IMG = 4                     # synthetic input spatial size
INPUT_SHAPE = 1             # in channels
HIDDEN_UNITS = 37           # conv1 out channels
C2 = 2 * HIDDEN_UNITS       # conv2 out channels (74)
OUTPUT_SHAPE = 10
KERNEL_CONV = 3
PADDING_CONV = 1
STRIDE_CONV = 1
KERNEL_POOLING = 2
PADDING_POOLING = 0
STRIDE_POOLING = 2
DROPOUT = 0.25              # identity at inference
FEATURES = 8
BN_EPS = 1e-5

CB = 128                            # lane width of every channel block
P1 = IMG // STRIDE_POOLING          # 2 : pool1 / conv2 spatial
NPOS1 = IMG * IMG                   # 16 conv1 output positions per sample
NPOS2 = P1 * P1                     # 4  conv2 output positions per sample
ROWS_OUT = 8                        # sublane-dense output slab rows
assert BATCH <= ROWS_OUT


# ----------------------------------------------------------------------------
# The single fused Pallas kernel: 3 matmuls + VPU maxes, all operands in VMEM.
# ----------------------------------------------------------------------------
def fused_forward_kernel(x_ref, w1_ref, b1_ref, w2_ref, b2_ref, wc_ref, bc_ref,
                         out_ref):
    f32, bf16 = jnp.float32, jnp.bfloat16

    # conv1 + BN1 + ReLU as one dense per-sample matmul.
    # c1 lane layout: block p = ((hp*2+wp)*2+dh)*2+dw, 128 lanes, ch 0..36 real.
    c1 = jnp.maximum(
        jnp.dot(x_ref[...], w1_ref[...], preferred_element_type=f32)
        + b1_ref[...], 0.0)                                    # (B, 16*128)

    # maxpool1 2x2/2: VPU max over the four (dh,dw) sub-blocks of each (hp,wp)
    # group; every slice is 128-lane aligned (no MXU, no gathers).
    pooled = []
    for g in range(NPOS2):
        def blk(j, g=g):
            return c1[:, (4 * g + j) * CB:(4 * g + j + 1) * CB]
        pooled.append(jnp.maximum(jnp.maximum(blk(0), blk(1)),
                                  jnp.maximum(blk(2), blk(3))))
    pool1 = jnp.concatenate(pooled, axis=1)                    # (B, 4*128)

    # conv2 + BN2 + ReLU: one dense matmul (4 in-pos x 37ch -> 4 out-pos x 74ch).
    c2 = jnp.maximum(
        jnp.dot(pool1.astype(bf16), w2_ref[...], preferred_element_type=f32)
        + b2_ref[...], 0.0)                                    # (B, 4*128)

    # maxpool2 2x2/2 -> 1x1: VPU max over the 4 output-position blocks.
    feat = jnp.maximum(
        jnp.maximum(c2[:, 0:CB], c2[:, CB:2 * CB]),
        jnp.maximum(c2[:, 2 * CB:3 * CB], c2[:, 3 * CB:4 * CB]))  # (B, 128)

    # Folded classifier (Linear -> Dropout(id) -> Linear -> Linear == 1 affine).
    logits = jnp.dot(feat.astype(bf16), wc_ref[...],
                     preferred_element_type=f32) + bc_ref[...]    # (B, 128)
    out_ref[...] = jnp.concatenate(
        [logits, jnp.zeros((ROWS_OUT - BATCH, CB), f32)], axis=0)


_VMEM = pl.BlockSpec(memory_space=pltpu.MemorySpace.VMEM)


@jax.jit
def forward(x_nchw, kp):
    # Wrapper is just reshape + bf16 cast: conv1's im2col lives in the weights.
    x_slab = x_nchw.reshape(x_nchw.shape[0], IMG * IMG).astype(jnp.bfloat16)
    ins = (x_slab, kp["w1"], kp["b1"], kp["w2"], kp["b2"], kp["wc"], kp["bc"])
    out = pl.pallas_call(
        fused_forward_kernel,
        out_shape=jax.ShapeDtypeStruct((ROWS_OUT, CB), jnp.float32),
        in_specs=[_VMEM] * len(ins),
        out_specs=_VMEM,
    )(*ins)
    return out[:x_nchw.shape[0], :OUTPUT_SHAPE]


# ----------------------------------------------------------------------------
# Parameter init (PyTorch layouts)
# ----------------------------------------------------------------------------
def init_params(key):
    ks = jax.random.split(key, 18)
    p = {}
    p["c1_w"] = 0.1 * jax.random.normal(
        ks[0], (HIDDEN_UNITS, INPUT_SHAPE, KERNEL_CONV, KERNEL_CONV), jnp.float32)
    p["c1_b"] = 0.1 * jax.random.normal(ks[1], (HIDDEN_UNITS,), jnp.float32)
    p["bn1_g"] = 1.0 + 0.1 * jax.random.normal(ks[2], (HIDDEN_UNITS,), jnp.float32)
    p["bn1_b"] = 0.1 * jax.random.normal(ks[3], (HIDDEN_UNITS,), jnp.float32)
    p["bn1_m"] = 0.1 * jax.random.normal(ks[4], (HIDDEN_UNITS,), jnp.float32)
    p["bn1_v"] = jax.random.uniform(ks[5], (HIDDEN_UNITS,), jnp.float32, 0.5, 1.5)
    p["c2_w"] = 0.1 * jax.random.normal(
        ks[6], (C2, HIDDEN_UNITS, KERNEL_CONV, KERNEL_CONV), jnp.float32)
    p["c2_b"] = 0.1 * jax.random.normal(ks[7], (C2,), jnp.float32)
    p["bn2_g"] = 1.0 + 0.1 * jax.random.normal(ks[8], (C2,), jnp.float32)
    p["bn2_b"] = 0.1 * jax.random.normal(ks[9], (C2,), jnp.float32)
    p["bn2_m"] = 0.1 * jax.random.normal(ks[10], (C2,), jnp.float32)
    p["bn2_v"] = jax.random.uniform(ks[11], (C2,), jnp.float32, 0.5, 1.5)
    # classifier stored as (in, out) == PyTorch weight transposed
    p["l1_w"] = 0.1 * jax.random.normal(ks[12], (74, 4 * FEATURES), jnp.float32)
    p["l1_b"] = 0.1 * jax.random.normal(ks[13], (1, 4 * FEATURES), jnp.float32)
    p["l2_w"] = 0.1 * jax.random.normal(ks[14], (4 * FEATURES, FEATURES), jnp.float32)
    p["l2_b"] = 0.1 * jax.random.normal(ks[15], (1, FEATURES), jnp.float32)
    p["l3_w"] = 0.1 * jax.random.normal(ks[16], (FEATURES, OUTPUT_SHAPE), jnp.float32)
    p["l3_b"] = 0.1 * jax.random.normal(ks[17], (1, OUTPUT_SHAPE), jnp.float32)
    return p


# ----------------------------------------------------------------------------
# One-time offline preparation: fold BN, im2col and the classifier chain into
# three bf16 weight matrices (+ f32 biases) in kernel-ready lane layouts.
# ----------------------------------------------------------------------------
def prepare_params(p):
    f32 = np.float32

    # ---- conv1 + BN1 folded into a dense per-sample map: 16 px -> 16*128 ----
    c1_w = np.asarray(p["c1_w"], f32)                       # (37, 1, 3, 3)
    s1 = np.asarray(p["bn1_g"], f32) / np.sqrt(np.asarray(p["bn1_v"], f32) + BN_EPS)
    c1_bias = (np.asarray(p["c1_b"], f32) * s1 + np.asarray(p["bn1_b"], f32)
               - np.asarray(p["bn1_m"], f32) * s1)
    w1d = np.zeros((IMG * IMG, NPOS1 * CB), f32)
    b1d = np.zeros((1, NPOS1 * CB), f32)
    for hp in range(P1):
        for wp in range(P1):
            for dh in range(KERNEL_POOLING):
                for dw in range(KERNEL_POOLING):
                    pidx = ((hp * P1 + wp) * KERNEL_POOLING + dh) * KERNEL_POOLING + dw
                    h = STRIDE_POOLING * hp + dh
                    w = STRIDE_POOLING * wp + dw
                    col0 = pidx * CB
                    b1d[0, col0:col0 + HIDDEN_UNITS] = c1_bias
                    for kh in range(KERNEL_CONV):
                        for kw in range(KERNEL_CONV):
                            hi = h + kh - PADDING_CONV
                            wi = w + kw - PADDING_CONV
                            if 0 <= hi < IMG and 0 <= wi < IMG:
                                s = hi * IMG + wi           # Cin == 1
                                w1d[s, col0:col0 + HIDDEN_UNITS] += \
                                    c1_w[:, 0, kh, kw] * s1

    # ---- conv2 + BN2 folded: (4 pos x 128) -> (4 pos x 128) dense map -------
    c2_w = np.asarray(p["c2_w"], f32)                       # (74, 37, 3, 3)
    s2 = np.asarray(p["bn2_g"], f32) / np.sqrt(np.asarray(p["bn2_v"], f32) + BN_EPS)
    c2_bias = (np.asarray(p["c2_b"], f32) * s2 + np.asarray(p["bn2_b"], f32)
               - np.asarray(p["bn2_m"], f32) * s2)
    w2d = np.zeros((NPOS2 * CB, NPOS2 * CB), f32)
    b2d = np.zeros((1, NPOS2 * CB), f32)
    for ho in range(P1):
        for wo in range(P1):
            q = ho * P1 + wo
            b2d[0, q * CB:q * CB + C2] = c2_bias
            for hi in range(P1):
                for wi in range(P1):
                    g = hi * P1 + wi
                    kh = hi - ho + PADDING_CONV              # always in [0, 3)
                    kw = wi - wo + PADDING_CONV
                    w2d[g * CB:g * CB + HIDDEN_UNITS, q * CB:q * CB + C2] = \
                        c2_w[:, :, kh, kw].T * s2[None, :]

    # ---- classifier fold: 3 Linears (+ identity dropout) -> one affine map --
    l1_w, l1_b = np.asarray(p["l1_w"], f32), np.asarray(p["l1_b"], f32)
    l2_w, l2_b = np.asarray(p["l2_w"], f32), np.asarray(p["l2_b"], f32)
    l3_w, l3_b = np.asarray(p["l3_w"], f32), np.asarray(p["l3_b"], f32)
    wc = l1_w @ l2_w @ l3_w                                  # (74, 10)
    bc = (l1_b @ l2_w + l2_b) @ l3_w + l3_b                  # (1, 10)
    wcd = np.zeros((CB, CB), f32)
    wcd[:wc.shape[0], :wc.shape[1]] = wc
    bcd = np.zeros((1, CB), f32)
    bcd[:, :bc.shape[1]] = bc

    return {
        "w1": jnp.asarray(w1d, dtype=jnp.bfloat16),
        "b1": jnp.asarray(b1d, dtype=jnp.float32),
        "w2": jnp.asarray(w2d, dtype=jnp.bfloat16),
        "b2": jnp.asarray(b2d, dtype=jnp.float32),
        "wc": jnp.asarray(wcd, dtype=jnp.bfloat16),
        "bc": jnp.asarray(bcd, dtype=jnp.float32),
    }


# ----------------------------------------------------------------------------
# Pure-JAX reference of the PyTorch module (f32 HIGHEST) for the self-check
# ----------------------------------------------------------------------------
def reference_forward(x_nchw, p):
    hi = jax.lax.Precision.HIGHEST
    x = jnp.transpose(x_nchw, (0, 2, 3, 1)).astype(jnp.float32)   # NHWC

    def stage(x, w, b, g, bt, rm, rv):
        y = jax.lax.conv_general_dilated(
            x, jnp.transpose(w, (2, 3, 1, 0)),
            window_strides=(STRIDE_CONV, STRIDE_CONV),
            padding=[(PADDING_CONV, PADDING_CONV)] * 2,
            dimension_numbers=("NHWC", "HWIO", "NHWC"), precision=hi)
        y = y + b[None, None, None, :]
        s = g / jnp.sqrt(rv + BN_EPS)
        y = jnp.maximum(y * s + (bt - rm * s), 0.0)
        return jax.lax.reduce_window(
            y, -jnp.inf, jax.lax.max,
            (1, KERNEL_POOLING, KERNEL_POOLING, 1),
            (1, STRIDE_POOLING, STRIDE_POOLING, 1), "VALID")

    x = stage(x, p["c1_w"], p["c1_b"], p["bn1_g"], p["bn1_b"], p["bn1_m"], p["bn1_v"])
    x = stage(x, p["c2_w"], p["c2_b"], p["bn2_g"], p["bn2_b"], p["bn2_m"], p["bn2_v"])
    feat = jnp.transpose(x, (0, 3, 1, 2)).reshape(x.shape[0], -1)  # NCHW flatten
    h = jnp.dot(feat, p["l1_w"], precision=hi) + p["l1_b"]         # dropout = id
    h = jnp.dot(h, p["l2_w"], precision=hi) + p["l2_b"]
    return jnp.dot(h, p["l3_w"], precision=hi) + p["l3_b"]


if __name__ == "__main__":
    key = jax.random.PRNGKey(0)
    k_param, k_x = jax.random.split(key)
    params = init_params(k_param)
    kparams = prepare_params(params)
    x = jax.random.normal(k_x, (BATCH, INPUT_SHAPE, IMG, IMG), jnp.float32)

    out = forward(x, kparams)
    jax.block_until_ready(out)
    assert out.shape == (BATCH, OUTPUT_SHAPE), out.shape
    assert bool(jnp.all(jnp.isfinite(out)))

    ref = reference_forward(x, params)
    np.testing.assert_allclose(np.asarray(out), np.asarray(ref),
                               rtol=2e-2, atol=2e-2)

    print("KERNEL_OK")
</pallas_src>

<mosaic_0001>
module attributes {stable_mosaic.version = 11 : i64} {
  func.func @fused_forward_kernel(%arg0: memref<2x16xbf16, #tpu.memory_space<vmem>>, %arg1: memref<16x2048xbf16, #tpu.memory_space<vmem>>, %arg2: memref<1x2048xf32, #tpu.memory_space<vmem>>, %arg3: memref<512x512xbf16, #tpu.memory_space<vmem>>, %arg4: memref<1x512xf32, #tpu.memory_space<vmem>>, %arg5: memref<128x128xbf16, #tpu.memory_space<vmem>>, %arg6: memref<1x128xf32, #tpu.memory_space<vmem>>, %arg7: memref<8x128xf32, #tpu.memory_space<vmem>>) attributes {dimension_semantics = [], scalar_prefetch = 0 : i64, scratch_operands = 0 : i64, tpu.core_type = #tpu.core_type<tc>} {
    %c0 = arith.constant 0 : index
    %c0_0 = arith.constant 0 : index
    %0 = vector.load %arg0[%c0, %c0_0] : memref<2x16xbf16, #tpu.memory_space<vmem>>, vector<2x16xbf16>
    %c0_1 = arith.constant 0 : index
    %c0_2 = arith.constant 0 : index
    %1 = vector.load %arg1[%c0_1, %c0_2] : memref<16x2048xbf16, #tpu.memory_space<vmem>>, vector<16x2048xbf16>
    %cst = arith.constant dense<0.000000e+00> : vector<2x2048xf32>
    %2 = tpu.matmul %0, %1, %cst {dimension_numbers = #tpu.dot_dimension_numbers<[1], [0], [0], [1], [0, 0, 1, 1], [], []>} : vector<2x16xbf16>, vector<16x2048xbf16>, vector<2x2048xf32> -> vector<2x2048xf32>
    %c0_3 = arith.constant 0 : index
    %c0_4 = arith.constant 0 : index
    %3 = vector.load %arg2[%c0_3, %c0_4] : memref<1x2048xf32, #tpu.memory_space<vmem>>, vector<1x2048xf32>
    %4 = vector.broadcast %3 : vector<1x2048xf32> to vector<2x2048xf32>
    %5 = arith.addf %2, %4 : vector<2x2048xf32>
    %cst_5 = arith.constant 0.000000e+00 : f32
    %6 = vector.broadcast %cst_5 : f32 to vector<2x2048xf32>
    %7 = arith.maximumf %5, %6 : vector<2x2048xf32>
    %8 = vector.extract_strided_slice %7 {offsets = [0, 0], sizes = [2, 128], strides = [1, 1]} : vector<2x2048xf32> to vector<2x128xf32>
    %9 = vector.extract_strided_slice %7 {offsets = [0, 128], sizes = [2, 128], strides = [1, 1]} : vector<2x2048xf32> to vector<2x128xf32>
    %10 = arith.maximumf %8, %9 : vector<2x128xf32>
    %11 = vector.extract_strided_slice %7 {offsets = [0, 256], sizes = [2, 128], strides = [1, 1]} : vector<2x2048xf32> to vector<2x128xf32>
    %12 = vector.extract_strided_slice %7 {offsets = [0, 384], sizes = [2, 128], strides = [1, 1]} : vector<2x2048xf32> to vector<2x128xf32>
    %13 = arith.maximumf %11, %12 : vector<2x128xf32>
    %14 = arith.maximumf %10, %13 : vector<2x128xf32>
    %15 = vector.extract_strided_slice %7 {offsets = [0, 512], sizes = [2, 128], strides = [1, 1]} : vector<2x2048xf32> to vector<2x128xf32>
    %16 = vector.extract_strided_slice %7 {offsets = [0, 640], sizes = [2, 128], strides = [1, 1]} : vector<2x2048xf32> to vector<2x128xf32>
    %17 = arith.maximumf %15, %16 : vector<2x128xf32>
    %18 = vector.extract_strided_slice %7 {offsets = [0, 768], sizes = [2, 128], strides = [1, 1]} : vector<2x2048xf32> to vector<2x128xf32>
    %19 = vector.extract_strided_slice %7 {offsets = [0, 896], sizes = [2, 128], strides = [1, 1]} : vector<2x2048xf32> to vector<2x128xf32>
    %20 = arith.maximumf %18, %19 : vector<2x128xf32>
    %21 = arith.maximumf %17, %20 : vector<2x128xf32>
    %22 = vector.extract_strided_slice %7 {offsets = [0, 1024], sizes = [2, 128], strides = [1, 1]} : vector<2x2048xf32> to vector<2x128xf32>
    %23 = vector.extract_strided_slice %7 {offsets = [0, 1152], sizes = [2, 128], strides = [1, 1]} : vector<2x2048xf32> to vector<2x128xf32>
    %24 = arith.maximumf %22, %23 : vector<2x128xf32>
    %25 = vector.extract_strided_slice %7 {offsets = [0, 1280], sizes = [2, 128], strides = [1, 1]} : vector<2x2048xf32> to vector<2x128xf32>
    %26 = vector.extract_strided_slice %7 {offsets = [0, 1408], sizes = [2, 128], strides = [1, 1]} : vector<2x2048xf32> to vector<2x128xf32>
    %27 = arith.maximumf %25, %26 : vector<2x128xf32>
    %28 = arith.maximumf %24, %27 : vector<2x128xf32>
    %29 = vector.extract_strided_slice %7 {offsets = [0, 1536], sizes = [2, 128], strides = [1, 1]} : vector<2x2048xf32> to vector<2x128xf32>
    %30 = vector.extract_strided_slice %7 {offsets = [0, 1664], sizes = [2, 128], strides = [1, 1]} : vector<2x2048xf32> to vector<2x128xf32>
    %31 = arith.maximumf %29, %30 : vector<2x128xf32>
    %32 = vector.extract_strided_slice %7 {offsets = [0, 1792], sizes = [2, 128], strides = [1, 1]} : vector<2x2048xf32> to vector<2x128xf32>
    %33 = vector.extract_strided_slice %7 {offsets = [0, 1920], sizes = [2, 128], strides = [1, 1]} : vector<2x2048xf32> to vector<2x128xf32>
    %34 = arith.maximumf %32, %33 : vector<2x128xf32>
    %35 = arith.maximumf %31, %34 : vector<2x128xf32>
    %36 = tpu.concatenate %14, %21, %28, %35 in 1 : vector<2x128xf32>, vector<2x128xf32>, vector<2x128xf32>, vector<2x128xf32> -> vector<2x512xf32>
    %37 = arith.truncf %36 : vector<2x512xf32> to vector<2x512xbf16>
    %c0_6 = arith.constant 0 : index
    %c0_7 = arith.constant 0 : index
    %38 = vector.load %arg3[%c0_6, %c0_7] : memref<512x512xbf16, #tpu.memory_space<vmem>>, vector<512x512xbf16>
    %cst_8 = arith.constant dense<0.000000e+00> : vector<2x512xf32>
    %39 = tpu.matmul %37, %38, %cst_8 {dimension_numbers = #tpu.dot_dimension_numbers<[1], [0], [0], [1], [0, 0, 1, 1], [], []>} : vector<2x512xbf16>, vector<512x512xbf16>, vector<2x512xf32> -> vector<2x512xf32>
    %c0_9 = arith.constant 0 : index
    %c0_10 = arith.constant 0 : index
    %40 = vector.load %arg4[%c0_9, %c0_10] : memref<1x512xf32, #tpu.memory_space<vmem>>, vector<1x512xf32>
    %41 = vector.broadcast %40 : vector<1x512xf32> to vector<2x512xf32>
    %42 = arith.addf %39, %41 : vector<2x512xf32>
    %cst_11 = arith.constant 0.000000e+00 : f32
    %43 = vector.broadcast %cst_11 : f32 to vector<2x512xf32>
    %44 = arith.maximumf %42, %43 : vector<2x512xf32>
    %45 = vector.extract_strided_slice %44 {offsets = [0, 0], sizes = [2, 128], strides = [1, 1]} : vector<2x512xf32> to vector<2x128xf32>
    %46 = vector.extract_strided_slice %44 {offsets = [0, 128], sizes = [2, 128], strides = [1, 1]} : vector<2x512xf32> to vector<2x128xf32>
    %47 = arith.maximumf %45, %46 : vector<2x128xf32>
    %48 = vector.extract_strided_slice %44 {offsets = [0, 256], sizes = [2, 128], strides = [1, 1]} : vector<2x512xf32> to vector<2x128xf32>
    %49 = vector.extract_strided_slice %44 {offsets = [0, 384], sizes = [2, 128], strides = [1, 1]} : vector<2x512xf32> to vector<2x128xf32>
    %50 = arith.maximumf %48, %49 : vector<2x128xf32>
    %51 = arith.maximumf %47, %50 : vector<2x128xf32>
    %52 = arith.truncf %51 : vector<2x128xf32> to vector<2x128xbf16>
    %c0_12 = arith.constant 0 : index
    %c0_13 = arith.constant 0 : index
    %53 = vector.load %arg5[%c0_12, %c0_13] : memref<128x128xbf16, #tpu.memory_space<vmem>>, vector<128x128xbf16>
    %cst_14 = arith.constant dense<0.000000e+00> : vector<2x128xf32>
    %54 = tpu.matmul %52, %53, %cst_14 {dimension_numbers = #tpu.dot_dimension_numbers<[1], [0], [0], [1], [0, 0, 1, 1], [], []>} : vector<2x128xbf16>, vector<128x128xbf16>, vector<2x128xf32> -> vector<2x128xf32>
    %c0_15 = arith.constant 0 : index
    %c0_16 = arith.constant 0 : index
    %55 = vector.load %arg6[%c0_15, %c0_16] : memref<1x128xf32, #tpu.memory_space<vmem>>, vector<1x128xf32>
    %56 = vector.broadcast %55 : vector<1x128xf32> to vector<2x128xf32>
    %57 = arith.addf %54, %56 : vector<2x128xf32>
    %cst_17 = arith.constant 0.000000e+00 : f32
    %58 = vector.broadcast %cst_17 : f32 to vector<6x128xf32>
    %59 = tpu.concatenate %57, %58 in 0 : vector<2x128xf32>, vector<6x128xf32> -> vector<8x128xf32>
    %c0_18 = arith.constant 0 : index
    %c0_19 = arith.constant 0 : index
    %60 = vector.load %arg7[%c0_18, %c0_19] : memref<8x128xf32, #tpu.memory_space<vmem>>, vector<8x128xf32>
    tpu.vector_store %arg7[%c0_18, %c0_19], %59 {strides = array<i32>} : memref<8x128xf32, #tpu.memory_space<vmem>>, vector<8x128xf32>,
    return
  }
}

</mosaic_0001>

<bundles_post_ra>
// kernel: forward.1
= control target key start
LH: loop header
LB: loop body
LE: loop exit
PB: predicated region body
PF: predicated region fallthrough
CT: control target
= control target key end

     0   :  { %12 = vsyncpa [#allocation3], 0  ;;  %s2607_s0 = inlined_call_operand.vmem [shape: bf16[2,16], index: 0, kind: input, shape index: {}]   ;;  %s2608_s1 = inlined_call_operand.hbm [shape: bf16[16,2048], index: 1, kind: input, shape index: {}]   ;;  %s2609_s2 = inlined_call_operand.vmem [shape: f32[1,2048], index: 2, kind: input, shape index: {}]   ;;  %s2610_s3 = inlined_call_operand.hbm [shape: bf16[512,512], index: 3, kind: input, shape index: {}]   ;;  %s2611_s4 = inlined_call_operand.hbm [shape: f32[1,512], index: 4, kind: input, shape index: {}]   ;;  %s2612_s5 = inlined_call_operand.hbm [shape: bf16[128,128], index: 5, kind: input, shape index: {}]   ;;  %s2613_s6 = inlined_call_operand.vmem [shape: f32[1,128], index: 6, kind: input, shape index: {}]   ;;  %s2614_s7 = inlined_call_operand.vmem [shape: f32[8,128], index: 7, kind: output, shape index: {}]  }
   0x1   :  { %13 = vsyncpa [#allocation5], 0  ;;  %s36_s26 = sshll.u32 %s2610_s3, 4  ;;  %s37_s26 = int_to_ptr.hbm [resolvable:$true] %s36_s26 }
   0x2   :  { %14 = vsyncpa [#allocation8], 0  ;;  %s2438_s27 = smov [#allocation4]   ;;  %s21_s8 = sshll.u32 %s2608_s1, 4  ;;  %s22_s8 = int_to_ptr.hbm [resolvable:$true] %s21_s8 }
   0x3   :  { %s38_s28 = sshll.u32 %s2438_s27, 4  ;;  %s2439_s9 = smov 256   ;;  %s39_s28 = int_to_ptr.vmem [resolvable:$true] %s38_s28 }
   0x4   :  { %s2440_s10 = smov 16   ;;  %s2441_s11 = smov [#allocation2]  }
   0x5   :  { %44 = dma.hbm_to_vmem [thread:$0]  %s37_s26, 16384, %s39_s28, [#allocation5], %s2439_s9, %s2439_s9, %s2440_s10  }
   0x6   :  { %s23_s12 = sshll.u32 %s2441_s11, 4  ;;  %s2442_s13 = smov 1024   ;;  %s24_s12 = int_to_ptr.vmem [resolvable:$true] %s23_s12 }
   0x7   :  { %s2443_s14 = smov 64   ;;  %s50_s16 = sshll.u32 %s2611_s4, 4  ;;  %s51_s16 = int_to_ptr.hbm [resolvable:$true] %s50_s16 }
   0x8   :  { %29 = dma.hbm_to_vmem [thread:$0]  %s22_s8, 2048, %s24_s12, [#allocation3], %s2442_s13, %s2442_s13, %s2443_s14  }
   0x9   :  { %s2444_s17 = smov [#allocation6]   ;;  %s60_s20 = sshll.u32 %s2612_s5, 4  ;;  %s61_s20 = int_to_ptr.hbm [resolvable:$true] %s60_s20 }
   0xa   :  { %s52_s18 = sshll.u32 %s2444_s17, 4  ;;  %s2445_s21 = smov [#allocation7]   ;;  %s53_s18 = int_to_ptr.vmem [resolvable:$true] %s52_s18 }
   0xb   :  { %55 = dma.hbm_to_vmem [thread:$0]  %s51_s16, 64, %s53_s18, [#allocation5]  }
   0xc   :  { %s62_s22 = sshll.u32 %s2445_s21, 4  ;;  %s2446_s23 = smov 4   ;;  %s63_s22 = int_to_ptr.vmem [resolvable:$true] %s62_s22 }
   0xd   :  { %68 = dma.hbm_to_vmem [thread:$0]  %s61_s20, 1024, %s63_s22, [#allocation8], %s2443_s14, %s2443_s14, %s2446_s23  }
   0xe   :  { %2432 = dma.done.wait [#allocation3], 2048  }
   0xf   :  { %2433 = vsyncadd [#allocation3], 4294965248 }
  0x10   :  { %2434 = dma.done.wait [#allocation5], 16448  }
  0x11   :  { %2435 = vsyncadd [#allocation5], 4294950848 }
  0x12   :  { %2436 = dma.done.wait [#allocation8], 1024  }
  0x13   :  { %2437 = vsyncadd [#allocation8], 4294966272  ;;  %vm221_vm0 = vcmask 130048   ;;  %v1552_v0 = vld [vmem:[#allocation2] sm:$0xf]  ;;  %vm1540_vm1 = vcmask 1041408  }
  0x14   :  { %v2182_v1 = vld [vmem:[#allocation2 + $0x3c] sm:$0xf0]  ;;  %v1560_v2 = vld [vmem:[#allocation2 + $0x8] sm:$0xf]  ;;  %v2175_v5 = vld [vmem:[#allocation2 + $0xc] sm:$0xf] }
  0x15   :  { %v1553_v3 = vor.u32 %v2182_v1, %v1552_v0  ;;  %v2183_v4 = vld [vmem:[#allocation2 + $0x44] sm:$0xf0]  ;;  %v1562_v6 = vld [vmem:[#allocation2 + $0x48] sm:$0xf0]  ;;  %v2502_v9 = vld [vmem:[%s2607_s0] sm:$0x1] }
  0x16   :  { %v1561_v7 = vor.u32 %v2183_v4, %v1560_v2  ;;  %v1565_v8 = vor.u32 %v2175_v5, %v1562_v6  ;;  %v2174_v10 = vld [vmem:[#allocation2 + $0x4] sm:$0xf]  ;;  %v1576_v13 = vld [vmem:[#allocation2 + $0x18] sm:$0xf]  ;;  %v2177_v15 = vld [vmem:[#allocation2 + $0x1c] sm:$0xf] }
  0x17   :  { %v1554_v11 = vld [vmem:[#allocation2 + $0x40] sm:$0xf0]  ;;  %232 = vmatpush.bf16.msra.mxu1 %v1553_v3  ;;  %v2185_v14 = vld [vmem:[#allocation2 + $0x54] sm:$0xf0]  ;;  %v1578_v17 = vld [vmem:[#allocation2 + $0x58] sm:$0xf0] }
  0x18   :  { %v1557_v12 = vor.u32 %v2174_v10, %v1554_v11  ;;  %258 = vmatpush.bf16.msra.mxu2 %v1561_v7  ;;  %271 = vmatpush.bf16.msra.mxu3 %v1565_v8  ;;  %v1577_v16 = vor.u32 %v2185_v14, %v1576_v13  ;;  %v1568_v18 = vld [vmem:[#allocation2 + $0x10] sm:$0xf]  ;;  %v1581_v20 = vor.u32 %v2177_v15, %v1578_v17  ;;  %v2176_v22 = vld [vmem:[#allocation2 + $0x14] sm:$0xf]  ;;  %v1592_v24 = vld [vmem:[#allocation2 + $0x28] sm:$0xf] }
  0x19   :  { %v2184_v19 = vld [vmem:[#allocation2 + $0x4c] sm:$0xf0]  ;;  %v1570_v23 = vld [vmem:[#allocation2 + $0x50] sm:$0xf0]  ;;  %v2187_v26 = vld [vmem:[#allocation2 + $0x64] sm:$0xf0] }
  0x1a   :  { %v1569_v21 = vor.u32 %v2184_v19, %v1568_v18  ;;  %1614 = vmatmul.msk.bf16.vlgmr.msra.gmra.mxu1 %vm221_vm0, %v2502_v9  ;;  %v1573_v25 = vor.u32 %v2176_v22, %v1570_v23  ;;  %v2179_v27 = vld [vmem:[#allocation2 + $0x2c] sm:$0xf]  ;;  %v1593_v29 = vor.u32 %v2187_v26, %v1592_v24  ;;  %v1584_v31 = vld [vmem:[#allocation2 + $0x20] sm:$0xf]  ;;  %v2178_v34 = vld [vmem:[#allocation2 + $0x24] sm:$0xf] }
  0x1b   :  { %245 = vmatpush.bf16.msrb.mxu1 %v1557_v12  ;;  %v1594_v28 = vld [vmem:[#allocation2 + $0x68] sm:$0xf0]  ;;  %1616 = vmatmul.msk.bf16.vlgmr.msra.gmra.mxu2 %vm221_vm0, %v2502_v9  ;;  %v2186_v32 = vld [vmem:[#allocation2 + $0x5c] sm:$0xf0]  ;;  %v1586_v35 = vld [vmem:[#allocation2 + $0x60] sm:$0xf0] }
  0x1c   :  { %310 = vmatpush.bf16.msrb.mxu2 %v1577_v16  ;;  %1617 = vmatmul.msk.bf16.vlgmr.msra.gmra.mxu3 %vm221_vm0, %v2502_v9  ;;  %v1597_v30 = vor.u32 %v2179_v27, %v1594_v28  ;;  %v1585_v33 = vor.u32 %v2186_v32, %v1584_v31  ;;  %v1608_v36 = vld [vmem:[#allocation2 + $0x38] sm:$0xf]  ;;  %v2181_v38 = vld [vmem:[#allocation2 + $0x3c] sm:$0xf]  ;;  %v1589_v40 = vor.u32 %v2178_v34, %v1586_v35  ;;  %v1600_v43 = vld [vmem:[#allocation2 + $0x30] sm:$0xf] }
  0x1d   :  { %323 = vmatpush.bf16.msrb.mxu3 %v1581_v20  ;;  %284 = vmatpush.bf16.msra.mxu0 %v1569_v21  ;;  %v2189_v37 = vld [vmem:[#allocation2 + $0x74] sm:$0xf0]  ;;  %v1610_v39 = vld [vmem:[#allocation2 + $0x78] sm:$0xf0]  ;;  %v2188_v44 = vld [vmem:[#allocation2 + $0x6c] sm:$0xf0] }
  0x1e   :  { %v1609_v41 = vor.u32 %v2189_v37, %v1608_v36  ;;  %v1613_v42 = vor.u32 %v2181_v38, %v1610_v39  ;;  %v1601_v45 = vor.u32 %v2188_v44, %v1600_v43  ;;  %v2180_v46 = vld [vmem:[#allocation2 + $0x34] sm:$0xf]  ;;  %v1744_v49 = vld [vmem:[#allocation4 + $0xe0] sm:$0xf]  ;;  %v2220_v50 = vld [vmem:[#allocation4 + $0xec] sm:$0xf0] }
  0x1f   :  { %297 = vmatpush.bf16.msra.mxu1 %v1573_v25  ;;  %v1602_v47 = vld [vmem:[#allocation2 + $0x70] sm:$0xf0]  ;;  %v1728_v51 = vld [vmem:[#allocation4 + $0xc0] sm:$0xf]  ;;  %v1745_v52 = vor.u32 %v2220_v50, %v1744_v49  ;;  %v2216_v53 = vld [vmem:[#allocation4 + $0xcc] sm:$0xf0] }
  0x20   :  { %362 = vmatpush.bf16.msra.mxu2 %v1593_v29  ;;  %1618 = vmatmul.msk.bf16.vlgmr.msra.gmra.mxu0 %vm221_vm0, %v2502_v9  ;;  %v1605_v48 = vor.u32 %v2180_v46, %v1602_v47  ;;  %v1729_v54 = vor.u32 %v2216_v53, %v1728_v51  ;;  %v1712_v55 = vld [vmem:[#allocation4 + $0xa0] sm:$0xf]  ;;  %v2212_v56 = vld [vmem:[#allocation4 + $0xac] sm:$0xf0]  ;;  %v2218_v20 = vld [vmem:[#allocation4 + $0xe4] sm:$0xf] }
  0x21   :  { %375 = vmatpush.bf16.msra.mxu3 %v1597_v30  ;;  %336 = vmatpush.bf16.msrb.mxu0 %v1585_v33  ;;  %v1713_v57 = vor.u32 %v2212_v56, %v1712_v55  ;;  %v1696_v58 = vld [vmem:[#allocation4 + $0x80] sm:$0xf]  ;;  %v2208_v59 = vld [vmem:[#allocation4 + $0x8c] sm:$0xf0]  ;;  %v1746_v21 = vld [vmem:[#allocation4 + $0xf0] sm:$0xf0] }
  0x22   :  { %v1697_v60 = vor.u32 %v2208_v59, %v1696_v58  ;;  %v1872_v61 = vld [vmem:[#allocation4 + $0x1e0] sm:$0xf]  ;;  %v2252_v62 = vld [vmem:[#allocation4 + $0x1ec] sm:$0xf0]  ;;  %v1749_v24 = vor.u32 %v2218_v20, %v1746_v21  ;;  %v2214_v30 = vld [vmem:[#allocation4 + $0xc4] sm:$0xf] }
  0x23   :  { %v1680_v63 = vld [vmem:[#allocation4 + $0x60] sm:$0xf]  ;;  %v2204_v0 = vld [vmem:[#allocation4 + $0x6c] sm:$0xf0]  ;;  %v1873_v1 = vor.u32 %v2252_v62, %v1872_v61  ;;  %v1730_v31 = vld [vmem:[#allocation4 + $0xd0] sm:$0xf0] }
  0x24   :  { %v1681_v2 = vor.u32 %v2204_v0, %v1680_v63  ;;  %v1856_v3 = vld [vmem:[#allocation4 + $0x1c0] sm:$0xf]  ;;  %v2248_v4 = vld [vmem:[#allocation4 + $0x1cc] sm:$0xf0]  ;;  %v1733_v33 = vor.u32 %v2214_v30, %v1730_v31  ;;  %v2210_v39 = vld [vmem:[#allocation4 + $0xa4] sm:$0xf] }
  0x25   :  { %388 = vmatpush.bf16.msra.mxu0 %v1601_v45  ;;  %v1664_v5 = vld [vmem:[#allocation4 + $0x40] sm:$0xf]  ;;  %v2200_v6 = vld [vmem:[#allocation4 + $0x4c] sm:$0xf0]  ;;  %v1857_v7 = vor.u32 %v2248_v4, %v1856_v3  ;;  %v2206_v47 = vld [vmem:[#allocation4 + $0x84] sm:$0xf] }
  0x26   :  { %v1665_v8 = vor.u32 %v2200_v6, %v1664_v5  ;;  %v1840_v10 = vld [vmem:[#allocation4 + $0x1a0] sm:$0xf]  ;;  %v2244_v11 = vld [vmem:[#allocation4 + $0x1ac] sm:$0xf0]  ;;  %v2202_v56 = vld [vmem:[#allocation4 + $0x64] sm:$0xf] }
  0x27   :  { %v1648_v12 = vld [vmem:[#allocation4 + $0x20] sm:$0xf]  ;;  %v2196_v13 = vld [vmem:[#allocation4 + $0x2c] sm:$0xf0]  ;;  %v1841_v14 = vor.u32 %v2244_v11, %v1840_v10  ;;  %v1682_v58 = vld [vmem:[#allocation4 + $0x70] sm:$0xf0] }
  0x28   :  { %v1649_v15 = vor.u32 %v2196_v13, %v1648_v12  ;;  %v1824_v16 = vld [vmem:[#allocation4 + $0x180] sm:$0xf]  ;;  %v2240_v17 = vld [vmem:[#allocation4 + $0x18c] sm:$0xf0]  ;;  %v2250_v59 = vld [vmem:[#allocation4 + $0x1e4] sm:$0xf]  ;;  %v1685_v61 = vor.u32 %v2202_v56, %v1682_v58 }
  0x29   :  { %v1632_v18 = vld [vmem:[#allocation4] sm:$0xf]  ;;  %v2192_v19 = vld [vmem:[#allocation4 + $0xc] sm:$0xf0]  ;;  %v1825_v22 = vor.u32 %v2240_v17, %v1824_v16  ;;  %v2198_v4 = vld [vmem:[#allocation4 + $0x44] sm:$0xf] }
  0x2a   :  { %1615 = vmatmul.msk.bf16.vlgmr.msrb.gmra.mxu1 %vm221_vm0, %v2502_v9  ;;  %v1633_v23 = vor.u32 %v2192_v19, %v1632_v18  ;;  %v1808_v25 = vld [vmem:[#allocation4 + $0x160] sm:$0xf]  ;;  %v2236_v26 = vld [vmem:[#allocation4 + $0x16c] sm:$0xf0]  ;;  %v1666_v5 = vld [vmem:[#allocation4 + $0x50] sm:$0xf0] }
  0x2b   :  { %1620 = vmatmul.msk.bf16.vlgmr.msrb.gmra.mxu2 %vm221_vm0, %v2502_v9  ;;  %349 = vmatpush.bf16.msrb.mxu1 %v1589_v40  ;;  %v2000_v27 = vld [vmem:[#allocation4 + $0x2e0] sm:$0xf]  ;;  %v1809_v28 = vor.u32 %v2236_v26, %v1808_v25  ;;  %v2284_v29 = vld [vmem:[#allocation4 + $0x2ec] sm:$0xf0]  ;;  %v1858_v10 = vld [vmem:[#allocation4 + $0x1d0] sm:$0xf0] }
  0x2c   :  { %1621 = vmatmul.msk.bf16.vlgmr.msrb.gmra.mxu3 %vm221_vm0, %v2502_v9  ;;  %414 = vmatpush.bf16.msrb.mxu2 %v1609_v41  ;;  %v2001_v32 = vor.u32 %v2284_v29, %v2000_v27  ;;  %v1792_v34 = vld [vmem:[#allocation4 + $0x140] sm:$0xf]  ;;  %v2232_v35 = vld [vmem:[#allocation4 + $0x14c] sm:$0xf0]  ;;  %v2194_v17 = vld [vmem:[#allocation4 + $0x24] sm:$0xf] }
  0x2d   :  { %427 = vmatpush.bf16.msrb.mxu3 %v1613_v42  ;;  %v1984_v36 = vld [vmem:[#allocation4 + $0x2c0] sm:$0xf]  ;;  %v1793_v37 = vor.u32 %v2232_v35, %v1792_v34  ;;  %v2280_v38 = vld [vmem:[#allocation4 + $0x2cc] sm:$0xf0]  ;;  %v1650_v18 = vld [vmem:[#allocation4 + $0x30] sm:$0xf0] }
  0x2e   :  { %v1985_v40 = vor.u32 %v2280_v38, %v1984_v36  ;;  %v1776_v42 = vld [vmem:[#allocation4 + $0x120] sm:$0xf]  ;;  %v2228_v43 = vld [vmem:[#allocation4 + $0x12c] sm:$0xf0]  ;;  %v1653_v20 = vor.u32 %v2194_v17, %v1650_v18  ;;  %v2242_v21 = vld [vmem:[#allocation4 + $0x1a4] sm:$0xf] }
  0x2f   :  { %v1968_v44 = vld [vmem:[#allocation4 + $0x2a0] sm:$0xf]  ;;  %v1777_v45 = vor.u32 %v2228_v43, %v1776_v42  ;;  %v2276_v46 = vld [vmem:[#allocation4 + $0x2ac] sm:$0xf0]  ;;  %v2190_v29 = vld [vmem:[#allocation4 + $0x4] sm:$0xf] }
  0x30   :  { %1622 = vmatmul.msk.bf16.vlgmr.msrb.gmra.mxu0 %vm221_vm0, %v2502_v9  ;;  %v1969_v49 = vor.u32 %v2276_v46, %v1968_v44  ;;  %v1760_v51 = vld [vmem:[#allocation4 + $0x100] sm:$0xf]  ;;  %v2272_v55 = vld [vmem:[#allocation4 + $0x28c] sm:$0xf0]  ;;  %v1634_v30 = vld [vmem:[#allocation4 + $0x10] sm:$0xf0] }
  0x31   :  { %1243 = vmatpush.bf16.msrb.mxu0 %v1745_v52  ;;  %v2224_v52 = vld [vmem:[#allocation4 + $0x10c] sm:$0xf0]  ;;  %v1936_v63 = vld [vmem:[#allocation4 + $0x260] sm:$0xf]  ;;  %v1826_v34 = vld [vmem:[#allocation4 + $0x190] sm:$0xf0] }
  0x32   :  { %v1761_v53 = vor.u32 %v2224_v52, %v1760_v51  ;;  %v2268_v0 = vld [vmem:[#allocation4 + $0x26c] sm:$0xf0]  ;;  %v1920_v12 = vld [vmem:[#allocation4 + $0x240] sm:$0xf]  ;;  %v2282_v44 = vld [vmem:[#allocation4 + $0x2e4] sm:$0xf] }
  0x33   :  { %v2316_v3 = vld [vmem:[#allocation4 + $0x3ec] sm:$0xf0]  ;;  %v2096_v26 = vld [vmem:[#allocation4 + $0x3a0] sm:$0xf]  ;;  %v2230_v51 = vld [vmem:[#allocation4 + $0x144] sm:$0xf] }
  0x34   :  { %v2264_v13 = vld [vmem:[#allocation4 + $0x24c] sm:$0xf0]  ;;  %v1888_v36 = vld [vmem:[#allocation4 + $0x200] sm:$0xf]  ;;  %v1794_v52 = vld [vmem:[#allocation4 + $0x150] sm:$0xf0] }
  0x35   :  { %1244 = vmatpush.bf16.msrb.mxu0 %v1729_v54  ;;  %v1952_v54 = vld [vmem:[#allocation4 + $0x280] sm:$0xf]  ;;  %v2312_v16 = vld [vmem:[#allocation4 + $0x3cc] sm:$0xf0]  ;;  %v1954_v17 = vld [vmem:[#allocation4 + $0x290] sm:$0xf0] }
  0x36   :  { %v2260_v25 = vld [vmem:[#allocation4 + $0x22c] sm:$0xf0]  ;;  %v2080_v38 = vld [vmem:[#allocation4 + $0x380] sm:$0xf] }
  0x37   :  { %v2296_v58 = vld [vmem:[#allocation4 + $0x34c] sm:$0xf0] }
  0x39   :  { %1245 = vmatpush.bf16.msrb.mxu0 %v1713_v57  ;;  %v1953_v57 = vor.u32 %v2272_v55, %v1952_v54  ;;  %v2278_v54 = vld [vmem:[#allocation4 + $0x2c4] sm:$0xf]  ;;  %v1986_v55 = vld [vmem:[#allocation4 + $0x2d0] sm:$0xf0] }
  0x3a   :  { %1619 = vmatmul.msk.bf16.vlgmr.msra.gmra.mxu1 %vm221_vm0, %v2502_v9  ;;  %v1989_v56 = vor.u32 %v2278_v54, %v1986_v55 }
  0x3b   :  { %1624 = vmatmul.msk.bf16.vlgmr.msra.gmra.mxu2 %vm221_vm0, %v2502_v9  ;;  %401 = vmatpush.bf16.msra.mxu1 %v1605_v48  ;;  %v1698_v48 = vld [vmem:[#allocation4 + $0x90] sm:$0xf0] }
  0x3c   :  { %1625 = vmatmul.msk.bf16.vlgmr.msra.gmra.mxu3 %vm221_vm0, %v2502_v9  ;;  %1269 = vmatpush.bf16.msra.mxu2 %v2001_v32  ;;  %v1701_v50 = vor.u32 %v2206_v47, %v1698_v48  ;;  %v1637_v32 = vor.u32 %v2190_v29, %v1634_v30  ;;  %v2064_v47 = vld [vmem:[#allocation4 + $0x360] sm:$0xf]  ;;  %v2300_v48 = vld [vmem:[#allocation4 + $0x36c] sm:$0xf0]  ;;  %v2314_v29 = vld [vmem:[#allocation4 + $0x3e4] sm:$0xf] }
  0x3d   :  { %1246 = vmatpush.bf16.msrb.mxu0 %v1697_v60  ;;  %v1874_v60 = vld [vmem:[#allocation4 + $0x1f0] sm:$0xf0] }
  0x3e   :  { %v1877_v62 = vor.u32 %v2250_v59, %v1874_v60  ;;  %v2226_v60 = vld [vmem:[#allocation4 + $0x124] sm:$0xf] }
  0x40   :  { %1626 = vmatmul.msk.bf16.vlgmr.msra.gmra.mxu0 %vm221_vm0, %v2502_v9  ;;  %1270 = vmatpush.bf16.msra.mxu2 %v1985_v40  ;;  %v2234_v40 = vld [vmem:[#allocation4 + $0x164] sm:$0xf] }
  0x41   :  { %1247 = vmatpush.bf16.msrb.mxu0 %v1681_v2  ;;  %v1937_v2 = vor.u32 %v2268_v0, %v1936_v63 }
  0x44   :  { %1271 = vmatpush.bf16.msra.mxu2 %v1969_v49 }
  0x45   :  { %1248 = vmatpush.bf16.msrb.mxu0 %v1665_v8  ;;  %v2246_v8 = vld [vmem:[#allocation4 + $0x1c4] sm:$0xf] }
  0x46   :  { %v1861_v11 = vor.u32 %v2246_v8, %v1858_v10  ;;  %v2032_v8 = vld [vmem:[#allocation4 + $0x320] sm:$0xf]  ;;  %v2292_v10 = vld [vmem:[#allocation4 + $0x32c] sm:$0xf0] }
  0x48   :  { %1272 = vmatpush.bf16.msra.mxu2 %v1953_v57  ;;  %v2048_v57 = vld [vmem:[#allocation4 + $0x340] sm:$0xf] }
  0x49   :  { %1249 = vmatpush.bf16.msrb.mxu0 %v1649_v15  ;;  %v1921_v15 = vor.u32 %v2264_v13, %v1920_v12  ;;  %v2049_v59 = vor.u32 %v2296_v58, %v2048_v57  ;;  %v2033_v12 = vor.u32 %v2292_v10, %v2032_v8  ;;  %v2222_v13 = vld [vmem:[#allocation4 + $0x104] sm:$0xf]  ;;  %v2217_v8 = vld [vmem:[#allocation4 + $0xd4] sm:$0xf0] }
  0x4a   :  { %1623 = vmatmul.msk.bf16.vlgmr.msrb.gmra.mxu1 %vm221_vm0, %v2502_v9 }
  0x4b   :  { %1628 = vmatmul.msk.bf16.vlgmr.msrb.gmra.mxu2 %vm221_vm0, %v2502_v9  ;;  %1256 = vmatpush.bf16.msrb.mxu1 %v1873_v1  ;;  %v2128_v1 = vld [vmem:[#allocation4 + $0x3e0] sm:$0xf] }
  0x4c   :  { %1629 = vmatmul.msk.bf16.vlgmr.msrb.gmra.mxu3 %vm221_vm0, %v2502_v9  ;;  %v2129_v6 = vor.u32 %v2316_v3, %v2128_v1  ;;  %1273 = vmatpush.bf16.msra.mxu2 %v1937_v2  ;;  %v1970_v1 = vld [vmem:[#allocation4 + $0x2b0] sm:$0xf0]  ;;  %v2541_v2 = vld [vmem:[%s2609_s2] sm:$0xff] }
  0x4d   :  { %1250 = vmatpush.bf16.msrb.mxu0 %v1633_v23  ;;  %v109_v18 = vperm.slane %v2541_v2, 0 }
  0x4e   :  { %1282 = vmatpush.bf16.msra.mxu3 %v2129_v6  ;;  %v112_v6 = vperm.slane %v2541_v2, 3 }
  0x4f   :  { %1257 = vmatpush.bf16.msrb.mxu1 %v1857_v7  ;;  %v1669_v7 = vor.u32 %v2198_v4, %v1666_v5  ;;  %v111_v4 = vperm.slane %v2541_v2, 2 }
  0x50   :  { %1274 = vmatpush.bf16.msra.mxu2 %v1921_v15 }
  0x51   :  { %1295 = vmatpush.bf16.msra.mxu0 %v1749_v24  ;;  %v1904_v24 = vld [vmem:[#allocation4 + $0x220] sm:$0xf] }
  0x52   :  { %v1905_v27 = vor.u32 %v2260_v25, %v1904_v24  ;;  %v2288_v24 = vld [vmem:[#allocation4 + $0x30c] sm:$0xf0] }
  0x53   :  { %1258 = vmatpush.bf16.msrb.mxu1 %v1841_v14  ;;  %v2112_v14 = vld [vmem:[#allocation4 + $0x3c0] sm:$0xf] }
  0x54   :  { %v2113_v19 = vor.u32 %v2312_v16, %v2112_v14  ;;  %1275 = vmatpush.bf16.msra.mxu2 %v1905_v27  ;;  %v1762_v14 = vld [vmem:[#allocation4 + $0x110] sm:$0xf0]  ;;  %v2270_v16 = vld [vmem:[#allocation4 + $0x284] sm:$0xf] }
  0x55   :  { %1296 = vmatpush.bf16.msra.mxu0 %v1733_v33  ;;  %v2238_v33 = vld [vmem:[#allocation4 + $0x184] sm:$0xf]  ;;  %v1765_v15 = vor.u32 %v2222_v13, %v1762_v14 }
  0x56   :  { %1283 = vmatpush.bf16.msra.mxu3 %v2113_v19  ;;  %v1829_v35 = vor.u32 %v2238_v33, %v1826_v34  ;;  %v2266_v27 = vld [vmem:[#allocation4 + $0x264] sm:$0xf] }
  0x57   :  { %1259 = vmatpush.bf16.msrb.mxu1 %v1825_v22  ;;  %v1842_v22 = vld [vmem:[#allocation4 + $0x1b0] sm:$0xf0] }
  0x58   :  { %v1845_v23 = vor.u32 %v2242_v21, %v1842_v22  ;;  %v1957_v21 = vor.u32 %v2270_v16, %v1954_v17  ;;  %v110_v22 = vperm.slane %v2541_v2, 1  ;;  %v114_v17 = vperm.slane %v2541_v2, 5 }
  0x5a   :  { %1627 = vmatmul.msk.bf16.vlgmr.msra.gmra.mxu1 %vm221_vm0, %v2502_v9  ;;  %v1714_v9 = vld [vmem:[#allocation4 + $0xb0] sm:$0xf0] }
  0x5b   :  { %1260 = vmatpush.bf16.msrb.mxu1 %v1809_v28  ;;  %v1717_v41 = vor.u32 %v2210_v39, %v1714_v9  ;;  %v2308_v28 = vld [vmem:[#allocation4 + $0x3ac] sm:$0xf0] }
  0x5c   :  { %v2097_v31 = vor.u32 %v2308_v28, %v2096_v26  ;;  %v2304_v9 = vld [vmem:[#allocation4 + $0x38c] sm:$0xf0]  ;;  %v1938_v28 = vld [vmem:[#allocation4 + $0x270] sm:$0xf0] }
  0x5d   :  { %1297 = vmatpush.bf16.msra.mxu0 %v1717_v41  ;;  %v1810_v41 = vld [vmem:[#allocation4 + $0x170] sm:$0xf0]  ;;  %v2081_v42 = vor.u32 %v2304_v9, %v2080_v38  ;;  %v1941_v30 = vor.u32 %v2266_v27, %v1938_v28 }
  0x5e   :  { %1284 = vmatpush.bf16.msra.mxu3 %v2097_v31  ;;  %v1813_v43 = vor.u32 %v2234_v40, %v1810_v41  ;;  %v2130_v31 = vld [vmem:[#allocation4 + $0x3f0] sm:$0xf0] }
  0x5f   :  { %1261 = vmatpush.bf16.msrb.mxu1 %v1793_v37  ;;  %v2256_v37 = vld [vmem:[#allocation4 + $0x20c] sm:$0xf0]  ;;  %v1922_v9 = vld [vmem:[#allocation4 + $0x250] sm:$0xf0] }
  0x60   :  { %v1889_v39 = vor.u32 %v2256_v37, %v1888_v36  ;;  %v2133_v37 = vor.u32 %v2314_v29, %v2130_v31  ;;  %v1704_v31 = vld [vmem:[#allocation4 + $0x88] sm:$0xf] }
  0x61   :  { %1298 = vmatpush.bf16.msra.mxu0 %v1701_v50  ;;  %v2065_v50 = vor.u32 %v2300_v48, %v2064_v47  ;;  %v2258_v48 = vld [vmem:[#allocation4 + $0x224] sm:$0xf] }
  0x62   :  { %1276 = vmatpush.bf16.msra.mxu2 %v1889_v39  ;;  %1285 = vmatpush.bf16.msra.mxu3 %v2081_v42  ;;  %v2262_v39 = vld [vmem:[#allocation4 + $0x244] sm:$0xf] }
  0x63   :  { %1262 = vmatpush.bf16.msrb.mxu1 %v1777_v45  ;;  %v2002_v45 = vld [vmem:[#allocation4 + $0x2f0] sm:$0xf0]  ;;  %v1925_v41 = vor.u32 %v2262_v39, %v1922_v9  ;;  %v2310_v42 = vld [vmem:[#allocation4 + $0x3c4] sm:$0xf]  ;;  %v1688_v9 = vld [vmem:[#allocation4 + $0x68] sm:$0xf] }
  0x64   :  { %v2005_v46 = vor.u32 %v2282_v44, %v2002_v45 }
  0x65   :  { %1299 = vmatpush.bf16.msra.mxu0 %v1685_v61  ;;  %v1778_v61 = vld [vmem:[#allocation4 + $0x130] sm:$0xf0] }
  0x66   :  { %1321 = vmatpush.bf16.msrb.mxu2 %v2005_v46  ;;  %1286 = vmatpush.bf16.msra.mxu3 %v2065_v50  ;;  %v1781_v0 = vor.u32 %v2226_v60, %v1778_v61  ;;  %v2306_v50 = vld [vmem:[#allocation4 + $0x3a4] sm:$0xf]  ;;  %v115_v60 = vperm.slane %v2541_v2, 6 }
  0x67   :  { %1263 = vmatpush.bf16.msrb.mxu1 %v1761_v53  ;;  %v1797_v53 = vor.u32 %v2230_v51, %v1794_v52  ;;  %v1752_v52 = vld [vmem:[#allocation4 + $0xe8] sm:$0xf] }
  0x69   :  { %1300 = vmatpush.bf16.msra.mxu0 %v1669_v7 }
  0x6a   :  { %1322 = vmatpush.bf16.msrb.mxu2 %v1989_v56  ;;  %1287 = vmatpush.bf16.msra.mxu3 %v2049_v59  ;;  %v2098_v56 = vld [vmem:[#allocation4 + $0x3b0] sm:$0xf0]  ;;  %v113_v59 = vperm.slane %v2541_v2, 4 }
  0x6b   :  { %1308 = vmatpush.bf16.msra.mxu1 %v1877_v62  ;;  %v2274_v62 = vld [vmem:[#allocation4 + $0x2a4] sm:$0xf]  ;;  %v2101_v57 = vor.u32 %v2306_v50, %v2098_v56 }
  0x6c   :  { %v1973_v3 = vor.u32 %v2274_v62, %v1970_v1  ;;  %v116_v62 = vperm.slane %v2541_v2, 7 }
  0x6d   :  { %1301 = vmatpush.bf16.msra.mxu0 %v1653_v20 }
  0x6e   :  { %1323 = vmatpush.bf16.msrb.mxu2 %v1973_v3  ;;  %1288 = vmatpush.bf16.msra.mxu3 %v2033_v12  ;;  %v2082_v12 = vld [vmem:[#allocation4 + $0x390] sm:$0xf0] }
  0x6f   :  { %1309 = vmatpush.bf16.msra.mxu1 %v1861_v11 }
  0x71   :  { %1302 = vmatpush.bf16.msra.mxu0 %v1637_v32 }
  0x72   :  { %1324 = vmatpush.bf16.msrb.mxu2 %v1957_v21 }
  0x73   :  { %1310 = vmatpush.bf16.msra.mxu1 %v1845_v23  ;;  %v2016_v23 = vld [vmem:[#allocation4 + $0x300] sm:$0xf] }
  0x74   :  { %v2017_v26 = vor.u32 %v2288_v24, %v2016_v23  ;;  %v2066_v23 = vld [vmem:[#allocation4 + $0x370] sm:$0xf0] }
  0x76   :  { %1289 = vmatpush.bf16.msra.mxu3 %v2017_v26  ;;  %1325 = vmatpush.bf16.msrb.mxu2 %v1941_v30 }
  0x77   :  { %1311 = vmatpush.bf16.msra.mxu1 %v1829_v35 }
  0x7a   :  { %1334 = vmatpush.bf16.msrb.mxu3 %v2133_v37  ;;  %1326 = vmatpush.bf16.msrb.mxu2 %v1925_v41  ;;  %v1880_v41 = vld [vmem:[#allocation4 + $0x1e8] sm:$0xf] }
  0x7b   :  { %1312 = vmatpush.bf16.msra.mxu1 %v1813_v43  ;;  %v2114_v43 = vld [vmem:[#allocation4 + $0x3d0] sm:$0xf0] }
  0x7c   :  { %v2117_v44 = vor.u32 %v2310_v42, %v2114_v43  ;;  %v2253_v43 = vld [vmem:[#allocation4 + $0x1f4] sm:$0xf0] }
  0x7e   :  { %1335 = vmatpush.bf16.msrb.mxu3 %v2117_v44 }
  0x7f   :  { %1313 = vmatpush.bf16.msra.mxu1 %v1797_v53  ;;  %v2221_v53 = vld [vmem:[#allocation4 + $0xf4] sm:$0xf0] }
  0x80   :  { %v1753_v3 = vor.u32 %v2221_v53, %v1752_v52 }
  0x82   :  { %1336 = vmatpush.bf16.msrb.mxu3 %v2101_v57  ;;  %v1881_v57 = vor.u32 %v2253_v43, %v1880_v41 }
  0x83   :  { %1314 = vmatpush.bf16.msra.mxu1 %v1781_v0 }
  0x87   :  { %1315 = vmatpush.bf16.msra.mxu1 %v1765_v15 }
  0x97   :  { %v234_v49 = vpop.f32.mrf.mxu1 }
  0x98   :  { %v235_v32 = vadd.f32 %v234_v49, %v109_v18  ;;  %v1906_v49 = vld [vmem:[#allocation4 + $0x230] sm:$0xf0]  ;;  %v1720_v18 = vld [vmem:[#allocation4 + $0xa8] sm:$0xf] }
  0x99   :  { %v1909_v55 = vor.u32 %v2258_v48, %v1906_v49 }
  0x9a   :  { %v433_v45 = vmax.f32 %v235_v32, 0.0  ;;  %v2209_v32 = vld [vmem:[#allocation4 + $0x94] sm:$0xf0] }
  0x9b   :  { %1327 = vmatpush.bf16.msrb.mxu2 %v1909_v55  ;;  %v1705_v39 = vor.u32 %v2209_v32, %v1704_v31 }
  0x9d   :  { %v2536_v63 = vpop.f32.mrf.mxu0 }
  0x9e   :  { %v260_v5 = vpop.f32.mrf.mxu2 }
  0x9f   :  { %v273_v7 = vpop.f32.mrf.mxu3  ;;  %v236_v11 = vpop.f32.mrf.mxu1  ;;  %v261_v19 = vadd.f32 %v260_v5, %v111_v4  ;;  %v1736_v4 = vld [vmem:[#allocation4 + $0xc8] sm:$0xf]  ;;  %v2254_v5 = vld [vmem:[#allocation4 + $0x204] sm:$0xf] }
  0xa0   :  { %v274_v20 = vadd.f32 %v273_v7, %v112_v6  ;;  %v1890_v6 = vld [vmem:[#allocation4 + $0x210] sm:$0xf0]  ;;  %v2302_v11 = vld [vmem:[#allocation4 + $0x384] sm:$0xf]  ;;  %v1737_v16 = vor.u32 %v2217_v8, %v1736_v4 }
  0xa1   :  { %v435_v33 = vmax.f32 %v261_v19, 0.0  ;;  %v1893_v10 = vor.u32 %v2254_v5, %v1890_v6  ;;  %v2085_v13 = vor.u32 %v2302_v11, %v2082_v12  ;;  %v287_v19 = vadd.f32 %v2536_v63, %v113_v59  ;;  %v2294_v63 = vld [vmem:[#allocation4 + $0x344] sm:$0xf]  ;;  %v2201_v59 = vld [vmem:[#allocation4 + $0x54] sm:$0xf0] }
  0xa2   :  { %v436_v34 = vmax.f32 %v274_v20, 0.0  ;;  %v2213_v20 = vld [vmem:[#allocation4 + $0xb4] sm:$0xf0]  ;;  %v1656_v11 = vld [vmem:[#allocation4 + $0x28] sm:$0xf] }
  0xa3   :  { %1328 = vmatpush.bf16.msrb.mxu2 %v1893_v10  ;;  %1337 = vmatpush.bf16.msrb.mxu3 %v2085_v13  ;;  %v1721_v30 = vor.u32 %v2213_v20, %v1720_v18  ;;  %v437_v2 = vmax.f32 %v287_v19, 0.0  ;;  %v2197_v13 = vld [vmem:[#allocation4 + $0x34] sm:$0xf0] }
  0xa4   :  { %v450_v46 = vmax.f32 %v435_v33, %v436_v34  ;;  %v2050_v34 = vld [vmem:[#allocation4 + $0x350] sm:$0xf0] }
  0xa5   :  { %v288_v25 = vpop.f32.mrf.mxu0 }
  0xa6   :  { %v262_v35 = vpop.f32.mrf.mxu2 }
  0xa7   :  { %v275_v36 = vpop.f32.mrf.mxu3  ;;  %v247_v38 = vpop.f32.mrf.mxu1  ;;  %v2053_v35 = vor.u32 %v2294_v63, %v2050_v34 }
  0xa8   :  { %v248_v40 = vadd.f32 %v247_v38, %v110_v22  ;;  %v2298_v22 = vld [vmem:[#allocation4 + $0x364] sm:$0xf]  ;;  %v2560_v38 = vld [vmem:[%s2609_s2 + $0x8] sm:$0xff] }
  0xa9   :  { %v2069_v24 = vor.u32 %v2298_v22, %v2066_v23  ;;  %v117_v49 = vperm.slane %v2560_v38, 0  ;;  %v119_v50 = vperm.slane %v2560_v38, 2  ;;  %v120_v52 = vperm.slane %v2560_v38, 3 }
  0xaa   :  { %v434_v47 = vmax.f32 %v248_v40, 0.0  ;;  %v2205_v40 = vld [vmem:[#allocation4 + $0x74] sm:$0xf0]  ;;  %v118_v10 = vperm.slane %v2560_v38, 1  ;;  %v1657_v22 = vor.u32 %v2197_v13, %v1656_v11  ;;  %v1706_v13 = vld [vmem:[#allocation4 + $0x98] sm:$0xf0] }
  0xab   :  { %1338 = vmatpush.bf16.msrb.mxu3 %v2069_v24  ;;  %v1689_v56 = vor.u32 %v2205_v40, %v1688_v9  ;;  %v1640_v24 = vld [vmem:[#allocation4 + $0x8] sm:$0xf]  ;;  %v2215_v9 = vld [vmem:[#allocation4 + $0xcc] sm:$0xf]  ;;  %v1738_v40 = vld [vmem:[#allocation4 + $0xd8] sm:$0xf0] }
  0xac   :  { %v449_v51 = vmax.f32 %v433_v45, %v434_v47  ;;  %v2290_v45 = vld [vmem:[#allocation4 + $0x324] sm:$0xf]  ;;  %v2277_v11 = vld [vmem:[#allocation4 + $0x2b4] sm:$0xf0] }
  0xad   :  { %v2547_v54 = vpop.f32.mrf.mxu0 }
  0xae   :  { %v451_v58 = vmax.f32 %v449_v51, %v450_v46  ;;  %v312_v61 = vpop.f32.mrf.mxu2  ;;  %v2034_v46 = vld [vmem:[#allocation4 + $0x330] sm:$0xf0]  ;;  %v339_v12 = vadd.f32 %v2547_v54, %v117_v49  ;;  %v2241_v54 = vld [vmem:[#allocation4 + $0x194] sm:$0xf0] }
  0xaf   :  { %v325_v0 = vpop.f32.mrf.mxu3  ;;  %v249_v1 = vpop.f32.mrf.mxu1  ;;  %v313_v14 = vadd.f32 %v312_v61, %v115_v60  ;;  %1339 = vmatpush.bf16.msrb.mxu3 %v2053_v35  ;;  %v2037_v47 = vor.u32 %v2290_v45, %v2034_v46  ;;  %v1864_v60 = vld [vmem:[#allocation4 + $0x1c8] sm:$0xf]  ;;  %v124_v45 = vperm.slane %v2560_v38, 7 }
  0xb0   :  { %v2552_v7 = vpack.c.bf16 %v451_v58, %v451_v58  ;;  %v326_v15 = vadd.f32 %v325_v0, %v116_v62  ;;  %v1672_v58 = vld [vmem:[#allocation4 + $0x48] sm:$0xf]  ;;  %v2249_v62 = vld [vmem:[#allocation4 + $0x1d4] sm:$0xf0]  ;;  %v2286_v0 = vld [vmem:[#allocation4 + $0x304] sm:$0xf] }
  0xb1   :  { %v439_v25 = vmax.f32 %v313_v14, 0.0  ;;  %v2018_v1 = vld [vmem:[#allocation4 + $0x310] sm:$0xf0]  ;;  %v1673_v6 = vor.u32 %v2201_v59, %v1672_v58  ;;  %v1865_v8 = vor.u32 %v2249_v62, %v1864_v60  ;;  %v1848_v14 = vld [vmem:[#allocation4 + $0x1a8] sm:$0xf] }
  0xb2   :  { %1251 = vmatmul.bf16.vlgmr.msrb.gmra.mxu0 %v2552_v7  ;;  %v440_v26 = vmax.f32 %v326_v15, 0.0  ;;  %v2245_v15 = vld [vmem:[#allocation4 + $0x1b4] sm:$0xf0]  ;;  %v1816_v35 = vld [vmem:[#allocation4 + $0x168] sm:$0xf] }
  0xb3   :  { %1347 = vmatpush.bf16.msrb.mxu0 %v1753_v3  ;;  %1340 = vmatpush.bf16.msrb.mxu3 %v2037_v47  ;;  %v2021_v3 = vor.u32 %v2286_v0, %v2018_v1  ;;  %v1849_v23 = vor.u32 %v2245_v15, %v1848_v14  ;;  %v2211_v58 = vld [vmem:[#allocation4 + $0xac] sm:$0xf]  ;;  %v1722_v59 = vld [vmem:[#allocation4 + $0xb8] sm:$0xf0]  ;;  %v122_v1 = vperm.slane %v2560_v38, 5 }
  0xb4   :  { %v453_v36 = vmax.f32 %v439_v25, %v440_v26  ;;  %v2193_v25 = vld [vmem:[#allocation4 + $0x14] sm:$0xf0]  ;;  %v441_v26 = vmax.f32 %v339_v12, 0.0  ;;  %v2207_v12 = vld [vmem:[#allocation4 + $0x8c] sm:$0xf] }
  0xb5   :  { %v340_v21 = vpop.f32.mrf.mxu0 }
  0xb6   :  { %v314_v27 = vpop.f32.mrf.mxu2 }
  0xb7   :  { %v327_v28 = vpop.f32.mrf.mxu3  ;;  %1348 = vmatpush.bf16.msrb.mxu0 %v1737_v16  ;;  %v299_v29 = vpop.f32.mrf.mxu1  ;;  %1341 = vmatpush.bf16.msrb.mxu3 %v2021_v3 }
  0xb8   :  { %v300_v33 = vadd.f32 %v299_v29, %v114_v17  ;;  %v1832_v28 = vld [vmem:[#allocation4 + $0x188] sm:$0xf]  ;;  %v2219_v29 = vld [vmem:[#allocation4 + $0xec] sm:$0xf] }
  0xba   :  { %v438_v37 = vmax.f32 %v300_v33, 0.0  ;;  %v1833_v33 = vor.u32 %v2241_v54, %v1832_v28 }
  0xbb   :  { %1349 = vmatpush.bf16.msrb.mxu0 %v1721_v30  ;;  %v1754_v30 = vld [vmem:[#allocation4 + $0xf8] sm:$0xf0] }
  0xbc   :  { %v452_v42 = vmax.f32 %v437_v2, %v438_v37  ;;  %v1641_v2 = vor.u32 %v2193_v25, %v1640_v24  ;;  %v1757_v34 = vor.u32 %v2219_v29, %v1754_v30  ;;  %v2008_v37 = vld [vmem:[#allocation4 + $0x2e8] sm:$0xf]  ;;  %v2273_v25 = vld [vmem:[#allocation4 + $0x294] sm:$0xf0]  ;;  %v2251_v29 = vld [vmem:[#allocation4 + $0x1ec] sm:$0xf] }
  0xbd   :  { %v2562_v44 = vpop.f32.mrf.mxu0  ;;  %v1960_v24 = vld [vmem:[#allocation4 + $0x288] sm:$0xf]  ;;  %v1882_v30 = vld [vmem:[#allocation4 + $0x1f8] sm:$0xf0] }
  0xbe   :  { %v454_v48 = vmax.f32 %v452_v42, %v453_v36  ;;  %v364_v51 = vpop.f32.mrf.mxu2  ;;  %v2237_v36 = vld [vmem:[#allocation4 + $0x174] sm:$0xf0]  ;;  %v123_v42 = vperm.slane %v2560_v38, 6 }
  0xbf   :  { %v377_v53 = vpop.f32.mrf.mxu3  ;;  %1350 = vmatpush.bf16.msrb.mxu0 %v1705_v39  ;;  %v301_v55 = vpop.f32.mrf.mxu1  ;;  %v365_v4 = vadd.f32 %v364_v51, %v119_v50  ;;  %v2285_v39 = vld [vmem:[#allocation4 + $0x2f4] sm:$0xf0]  ;;  %v1817_v49 = vor.u32 %v2237_v36, %v1816_v35  ;;  %v1885_v36 = vor.u32 %v2251_v29, %v1882_v30  ;;  %v1802_v29 = vld [vmem:[#allocation4 + $0x158] sm:$0xf0]  ;;  %v2279_v30 = vld [vmem:[#allocation4 + $0x2cc] sm:$0xf] }
  0xc0   :  { %v2567_v61 = vpack.c.bf16 %v454_v48, %v454_v48  ;;  %v378_v5 = vadd.f32 %v377_v53, %v120_v52  ;;  %v121_v48 = vperm.slane %v2560_v38, 4  ;;  %v2009_v51 = vor.u32 %v2285_v39, %v2008_v37  ;;  %v1800_v53 = vld [vmem:[#allocation4 + $0x148] sm:$0xf]  ;;  %v2233_v55 = vld [vmem:[#allocation4 + $0x154] sm:$0xf0] }
  0xc1   :  { %v443_v17 = vmax.f32 %v365_v4, 0.0  ;;  %v1741_v52 = vor.u32 %v2215_v9, %v1738_v40  ;;  %v1801_v0 = vor.u32 %v2233_v55, %v1800_v53  ;;  %v1768_v38 = vld [vmem:[#allocation4 + $0x108] sm:$0xf]  ;;  %v2317_v35 = vld [vmem:[#allocation4 + $0x3f4] sm:$0xf0] }
  0xc2   :  { %1264 = vmatmul.bf16.vlgmr.msrb.gmra.mxu1 %v2567_v61  ;;  %1303 = vmatmul.bf16.vlgmr.msra.gmra.mxu0 %v2552_v7  ;;  %v444_v18 = vmax.f32 %v378_v5, 0.0  ;;  %v391_v3 = vadd.f32 %v2562_v44, %v121_v48  ;;  %v1725_v5 = vor.u32 %v2211_v58, %v1722_v59  ;;  %v2269_v37 = vld [vmem:[#allocation4 + $0x274] sm:$0xf0]  ;;  %v2199_v39 = vld [vmem:[#allocation4 + $0x4c] sm:$0xf] }
  0xc3   :  { %1351 = vmatpush.bf16.msrb.mxu0 %v1689_v56  ;;  %1360 = vmatpush.bf16.msrb.mxu1 %v1881_v57  ;;  %v1992_v56 = vld [vmem:[#allocation4 + $0x2c8] sm:$0xf]  ;;  %v2281_v57 = vld [vmem:[#allocation4 + $0x2d4] sm:$0xf0]  ;;  %v1674_v9 = vld [vmem:[#allocation4 + $0x58] sm:$0xf0] }
  0xc4   :  { %v456_v31 = vmax.f32 %v443_v17, %v444_v18  ;;  %v1993_v4 = vor.u32 %v2281_v57, %v1992_v56  ;;  %v1677_v48 = vor.u32 %v2199_v39, %v1674_v9  ;;  %v2265_v55 = vld [vmem:[#allocation4 + $0x254] sm:$0xf0]  ;;  %v2195_v56 = vld [vmem:[#allocation4 + $0x2c] sm:$0xf]  ;;  %v1658_v57 = vld [vmem:[#allocation4 + $0x38] sm:$0xf0] }
  0xc5   :  { %v392_v16 = vpop.f32.mrf.mxu0  ;;  %v2243_v58 = vld [vmem:[#allocation4 + $0x1ac] sm:$0xf]  ;;  %v1850_v59 = vld [vmem:[#allocation4 + $0x1b8] sm:$0xf0] }
  0xc6   :  { %v366_v19 = vpop.f32.mrf.mxu2  ;;  %v1978_v39 = vld [vmem:[#allocation4 + $0x2b8] sm:$0xf0] }
  0xc7   :  { %v379_v20 = vpop.f32.mrf.mxu3  ;;  %1352 = vmatpush.bf16.msrb.mxu0 %v1673_v6  ;;  %1361 = vmatpush.bf16.msrb.mxu1 %v1865_v8  ;;  %v351_v21 = vpop.f32.mrf.mxu1  ;;  %v1784_v6 = vld [vmem:[#allocation4 + $0x128] sm:$0xf]  ;;  %v2229_v8 = vld [vmem:[#allocation4 + $0x134] sm:$0xf0] }
  0xc8   :  { %v352_v27 = vadd.f32 %v351_v21, %v118_v10  ;;  %v1976_v10 = vld [vmem:[#allocation4 + $0x2a8] sm:$0xf]  ;;  %v1785_v19 = vor.u32 %v2229_v8, %v1784_v6  ;;  %v445_v20 = vmax.f32 %v391_v3, 0.0  ;;  %v2261_v6 = vld [vmem:[#allocation4 + $0x234] sm:$0xf0] }
  0xc9   :  { %v1977_v21 = vor.u32 %v2277_v11, %v1976_v10  ;;  %v2104_v3 = vld [vmem:[#allocation4 + $0x3a8] sm:$0xf]  ;;  %v2191_v8 = vld [vmem:[#allocation4 + $0xc] sm:$0xf]  ;;  %v1642_v10 = vld [vmem:[#allocation4 + $0x18] sm:$0xf0] }
  0xca   :  { %v442_v32 = vmax.f32 %v352_v27, 0.0  ;;  %v1690_v27 = vld [vmem:[#allocation4 + $0x78] sm:$0xf0]  ;;  %v2239_v11 = vld [vmem:[#allocation4 + $0x18c] sm:$0xf] }
  0xcb   :  { %1353 = vmatpush.bf16.msrb.mxu0 %v1657_v22  ;;  %1362 = vmatpush.bf16.msrb.mxu1 %v1849_v23  ;;  %v1709_v22 = vor.u32 %v2207_v12, %v1706_v13  ;;  %v2225_v23 = vld [vmem:[#allocation4 + $0x114] sm:$0xf0]  ;;  %v1834_v12 = vld [vmem:[#allocation4 + $0x198] sm:$0xf0] }
  0xcc   :  { %v455_v63 = vmax.f32 %v441_v26, %v442_v32  ;;  %v2203_v26 = vld [vmem:[#allocation4 + $0x6c] sm:$0xf] }
  0xce   :  { %v457_v41 = vmax.f32 %v455_v63, %v456_v31  ;;  %v416_v43 = vpop.f32.mrf.mxu2  ;;  %v1769_v31 = vor.u32 %v2225_v23, %v1768_v38  ;;  %v1944_v63 = vld [vmem:[#allocation4 + $0x268] sm:$0xf]  ;;  %v2257_v38 = vld [vmem:[#allocation4 + $0x214] sm:$0xf0] }
  0xcf   :  { %v429_v46 = vpop.f32.mrf.mxu3  ;;  %1354 = vmatpush.bf16.msrb.mxu0 %v1641_v2  ;;  %1363 = vmatpush.bf16.msrb.mxu1 %v1833_v33  ;;  %v353_v47 = vpop.f32.mrf.mxu1  ;;  %v417_v60 = vadd.f32 %v416_v43, %v123_v42  ;;  %v1961_v2 = vor.u32 %v2273_v25, %v1960_v24  ;;  %v1693_v33 = vor.u32 %v2203_v26, %v1690_v27  ;;  %v1866_v42 = vld [vmem:[#allocation4 + $0x1d8] sm:$0xf0]  ;;  %v2072_v25 = vld [vmem:[#allocation4 + $0x368] sm:$0xf]  ;;  %v2301_v26 = vld [vmem:[#allocation4 + $0x374] sm:$0xf0] }
  0xd0   :  { %v2576_v50 = vpack.c.bf16 %v457_v41, %v457_v41  ;;  %v430_v62 = vadd.f32 %v429_v46, %v124_v45  ;;  %v2247_v41 = vld [vmem:[#allocation4 + $0x1cc] sm:$0xf]  ;;  %v1945_v47 = vor.u32 %v2269_v37, %v1944_v63 }
  0xd1   :  { %v447_v14 = vmax.f32 %v417_v60, 0.0  ;;  %v1869_v53 = vor.u32 %v2247_v41, %v1866_v42  ;;  %v2275_v37 = vld [vmem:[#allocation4 + $0x2ac] sm:$0xf] }
  0xd2   :  { %1277 = vmatmul.bf16.vlgmr.msra.gmra.mxu2 %v2576_v50  ;;  %1316 = vmatmul.bf16.vlgmr.msra.gmra.mxu1 %v2567_v61  ;;  %v448_v15 = vmax.f32 %v430_v62, 0.0  ;;  %v1981_v42 = vor.u32 %v2275_v37, %v1978_v39 }
  0xd3   :  { %1399 = vmatpush.bf16.msra.mxu0 %v1757_v34  ;;  %1364 = vmatpush.bf16.msrb.mxu1 %v1817_v49  ;;  %v2136_v34 = vld [vmem:[#allocation4 + $0x3e8] sm:$0xf] }
  0xd4   :  { %1355 = vmatmul.bf16.vlgmr.msrb.gmra.mxu0 %v2552_v7  ;;  %1373 = vmatpush.bf16.msra.mxu2 %v2009_v51  ;;  %v459_v28 = vmax.f32 %v447_v14, %v448_v15  ;;  %v2137_v45 = vor.u32 %v2317_v35, %v2136_v34  ;;  %v1928_v49 = vld [vmem:[#allocation4 + $0x248] sm:$0xf]  ;;  %v1645_v15 = vor.u32 %v2191_v8, %v1642_v10  ;;  %v2227_v35 = vld [vmem:[#allocation4 + $0x12c] sm:$0xf] }
  0xd5   :  { %v2120_v51 = vld [vmem:[#allocation4 + $0x3c8] sm:$0xf]  ;;  %v1929_v62 = vor.u32 %v2265_v55, %v1928_v49  ;;  %v2307_v10 = vld [vmem:[#allocation4 + $0x3ac] sm:$0xf] }
  0xd6   :  { %v418_v16 = vpop.f32.mrf.mxu2 }
  0xd7   :  { %1400 = vmatpush.bf16.msra.mxu0 %v1741_v52  ;;  %v431_v17 = vpop.f32.mrf.mxu3  ;;  %1365 = vmatpush.bf16.msrb.mxu1 %v1801_v0  ;;  %v403_v18 = vpop.f32.mrf.mxu1  ;;  %v2313_v52 = vld [vmem:[#allocation4 + $0x3d4] sm:$0xf0]  ;;  %v1661_v0 = vor.u32 %v2195_v56, %v1658_v57  ;;  %v2088_v16 = vld [vmem:[#allocation4 + $0x388] sm:$0xf]  ;;  %v2315_v56 = vld [vmem:[#allocation4 + $0x3ec] sm:$0xf] }
  0xd8   :  { %1374 = vmatpush.bf16.msra.mxu2 %v1993_v4  ;;  %v404_v44 = vadd.f32 %v403_v18, %v122_v1  ;;  %v2121_v60 = vor.u32 %v2313_v52, %v2120_v51  ;;  %v1912_v1 = vld [vmem:[#allocation4 + $0x228] sm:$0xf]  ;;  %v2309_v4 = vld [vmem:[#allocation4 + $0x3b4] sm:$0xf0]  ;;  %v1837_v18 = vor.u32 %v2239_v11, %v1834_v12  ;;  %v2138_v57 = vld [vmem:[#allocation4 + $0x3f8] sm:$0xf0] }
  0xd9   :  { %v2105_v13 = vor.u32 %v2309_v4, %v2104_v3  ;;  %v1913_v14 = vor.u32 %v2261_v6, %v1912_v1  ;;  %v2305_v17 = vld [vmem:[#allocation4 + $0x394] sm:$0xf0]  ;;  %v2024_v51 = vld [vmem:[#allocation4 + $0x308] sm:$0xf]  ;;  %v2311_v1 = vld [vmem:[#allocation4 + $0x3cc] sm:$0xf] }
  0xda   :  { %v446_v54 = vmax.f32 %v404_v44, 0.0  ;;  %v1818_v44 = vld [vmem:[#allocation4 + $0x178] sm:$0xf0]  ;;  %v2089_v23 = vor.u32 %v2305_v17, %v2088_v16  ;;  %v2289_v52 = vld [vmem:[#allocation4 + $0x314] sm:$0xf0] }
  0xdb   :  { %1401 = vmatpush.bf16.msra.mxu0 %v1725_v5  ;;  %1366 = vmatpush.bf16.msrb.mxu1 %v1785_v19  ;;  %v1853_v5 = vor.u32 %v2243_v58, %v1850_v59  ;;  %v1896_v19 = vld [vmem:[#allocation4 + $0x208] sm:$0xf]  ;;  %v2267_v58 = vld [vmem:[#allocation4 + $0x26c] sm:$0xf]  ;;  %v1946_v59 = vld [vmem:[#allocation4 + $0x278] sm:$0xf0] }
  0xdc   :  { %v458_v32 = vmax.f32 %v445_v20, %v446_v54  ;;  %1375 = vmatpush.bf16.msra.mxu2 %v1977_v21  ;;  %v2235_v20 = vld [vmem:[#allocation4 + $0x16c] sm:$0xf]  ;;  %v1897_v24 = vor.u32 %v2257_v38, %v1896_v19  ;;  %v2122_v3 = vld [vmem:[#allocation4 + $0x3d8] sm:$0xf0] }
  0xdd   :  { %v2283_v21 = vld [vmem:[#allocation4 + $0x2ec] sm:$0xf]  ;;  %v1821_v27 = vor.u32 %v2235_v20, %v1818_v44  ;;  %v2125_v6 = vor.u32 %v2311_v1, %v2122_v3  ;;  %v2106_v11 = vld [vmem:[#allocation4 + $0x3b8] sm:$0xf0] }
  0xde   :  { %v460_v40 = vmax.f32 %v458_v32, %v459_v28  ;;  %v2231_v54 = vld [vmem:[#allocation4 + $0x14c] sm:$0xf]  ;;  %v2073_v32 = vor.u32 %v2301_v26, %v2072_v25  ;;  %v2090_v17 = vld [vmem:[#allocation4 + $0x398] sm:$0xf0] }
  0xdf   :  { %1402 = vmatpush.bf16.msra.mxu0 %v1709_v22  ;;  %1367 = vmatpush.bf16.msrb.mxu1 %v1769_v31  ;;  %v405_v43 = vpop.f32.mrf.mxu1  ;;  %v2010_v22 = vld [vmem:[#allocation4 + $0x2f8] sm:$0xf0]  ;;  %v1805_v63 = vor.u32 %v2231_v54, %v1802_v29  ;;  %v2263_v4 = vld [vmem:[#allocation4 + $0x24c] sm:$0xf] }
  0xe0   :  { %v2583_v46 = vpack.c.bf16 %v460_v40, %v460_v40  ;;  %1376 = vmatpush.bf16.msra.mxu2 %v1961_v2  ;;  %v2013_v28 = vor.u32 %v2283_v21, %v2010_v22  ;;  %v1994_v31 = vld [vmem:[#allocation4 + $0x2d8] sm:$0xf0]  ;;  %v2056_v2 = vld [vmem:[#allocation4 + $0x348] sm:$0xf]  ;;  %v2223_v43 = vld [vmem:[#allocation4 + $0x10c] sm:$0xf] }
  0xe1   :  { %v1997_v34 = vor.u32 %v2279_v30, %v1994_v31  ;;  %v2040_v40 = vld [vmem:[#allocation4 + $0x328] sm:$0xf]  ;;  %v2259_v12 = vld [vmem:[#allocation4 + $0x22c] sm:$0xf]  ;;  %v1898_v19 = vld [vmem:[#allocation4 + $0x218] sm:$0xf0] }
  0xe2   :  { %1290 = vmatmul.bf16.vlgmr.msra.gmra.mxu3 %v2583_v46  ;;  %1329 = vmatmul.bf16.vlgmr.msrb.gmra.mxu2 %v2576_v50  ;;  %v2303_v16 = vld [vmem:[#allocation4 + $0x38c] sm:$0xf]  ;;  %v2074_v44 = vld [vmem:[#allocation4 + $0x378] sm:$0xf0]  ;;  %v2595_v31 = vld [vmem:[#allocation6] sm:$0xf] }
  0xe3   :  { %1403 = vmatpush.bf16.msra.mxu0 %v1693_v33  ;;  %1412 = vmatpush.bf16.msra.mxu1 %v1885_v36  ;;  %v2297_v33 = vld [vmem:[#allocation4 + $0x354] sm:$0xf0]  ;;  %v1786_v36 = vld [vmem:[#allocation4 + $0x138] sm:$0xf0]  ;;  %v2299_v20 = vld [vmem:[#allocation4 + $0x36c] sm:$0xf] }
  0xe4   :  { %1368 = vmatmul.bf16.vlgmr.msrb.gmra.mxu1 %v2567_v61  ;;  %1386 = vmatpush.bf16.msra.mxu3 %v2137_v45  ;;  %v2057_v9 = vor.u32 %v2297_v33, %v2056_v2  ;;  %v1789_v41 = vor.u32 %v2227_v35, %v1786_v36  ;;  %v1770_v45 = vld [vmem:[#allocation4 + $0x118] sm:$0xf0]  ;;  %v2077_v21 = vor.u32 %v2299_v20, %v2074_v44  ;;  %v2295_v22 = vld [vmem:[#allocation4 + $0x34c] sm:$0xf]  ;;  %v595_v2 = vperm.slane %v2595_v31, 0 }
  0xe5   :  { %1377 = vmatpush.bf16.msra.mxu2 %v1945_v47  ;;  %v2271_v47 = vld [vmem:[#allocation4 + $0x28c] sm:$0xf]  ;;  %v2042_v26 = vld [vmem:[#allocation4 + $0x338] sm:$0xf0]  ;;  %v596_v37 = vperm.slane %v2595_v31, 1  ;;  %v598_v20 = vperm.slane %v2595_v31, 3 }
  0xe6   :  { %v2291_v25 = vld [vmem:[#allocation4 + $0x32c] sm:$0xf]  ;;  %v2026_v54 = vld [vmem:[#allocation4 + $0x318] sm:$0xf0] }
  0xe7   :  { %1404 = vmatpush.bf16.msra.mxu0 %v1677_v48  ;;  %1413 = vmatpush.bf16.msra.mxu1 %v1869_v53  ;;  %v1962_v48 = vld [vmem:[#allocation4 + $0x298] sm:$0xf0]  ;;  %v1773_v53 = vor.u32 %v2223_v43, %v1770_v45 }
  0xe8   :  { %1387 = vmatpush.bf16.msra.mxu3 %v2121_v60  ;;  %v1965_v55 = vor.u32 %v2271_v47, %v1962_v48  ;;  %v2025_v60 = vor.u32 %v2289_v52, %v2024_v51 }
  0xe9   :  { %1378 = vmatpush.bf16.msra.mxu2 %v1929_v62  ;;  %v2141_v62 = vor.u32 %v2315_v56, %v2138_v57  ;;  %v2325_v56 = vld [vmem:[#allocation7 + $0x38] sm:$0xff]  ;;  %v2324_v57 = vld [vmem:[#allocation7 + $0x30] sm:$0xff] }
  0xeb   :  { %1405 = vmatpush.bf16.msra.mxu0 %v1661_v0  ;;  %1414 = vmatpush.bf16.msra.mxu1 %v1853_v5  ;;  %v1949_v0 = vor.u32 %v2267_v58, %v1946_v59  ;;  %v1930_v5 = vld [vmem:[#allocation4 + $0x258] sm:$0xf0] }
  0xec   :  { %1388 = vmatpush.bf16.msra.mxu3 %v2105_v13  ;;  %v1933_v8 = vor.u32 %v2263_v4, %v1930_v5  ;;  %v1914_v13 = vld [vmem:[#allocation4 + $0x238] sm:$0xf0] }
  0xed   :  { %1379 = vmatpush.bf16.msra.mxu2 %v1913_v14  ;;  %v2109_v14 = vor.u32 %v2307_v10, %v2106_v11  ;;  %v2321_v10 = vld [vmem:[#allocation7 + $0x18] sm:$0xff] }
  0xef   :  { %1406 = vmatpush.bf16.msra.mxu0 %v1645_v15  ;;  %1415 = vmatpush.bf16.msra.mxu1 %v1837_v18  ;;  %v1917_v15 = vor.u32 %v2259_v12, %v1914_v13  ;;  %v2255_v18 = vld [vmem:[#allocation4 + $0x20c] sm:$0xf] }
  0xf0   :  { %1389 = vmatpush.bf16.msra.mxu3 %v2089_v23  ;;  %v1901_v38 = vor.u32 %v2255_v18, %v1898_v19  ;;  %v2058_v23 = vld [vmem:[#allocation4 + $0x358] sm:$0xf0]  ;;  %v2318_v18 = vld [vmem:[#allocation7] sm:$0xff] }
  0xf1   :  { %1380 = vmatpush.bf16.msra.mxu2 %v1897_v24  ;;  %v2061_v24 = vor.u32 %v2295_v22, %v2058_v23 }
  0xf2   :  { %1407 = vmatmul.bf16.vlgmr.msra.gmra.mxu0 %v2552_v7  ;;  %1342 = vmatmul.bf16.vlgmr.msrb.gmra.mxu3 %v2583_v46  ;;  %v2293_v7 = vld [vmem:[#allocation4 + $0x334] sm:$0xf0] }
  0xf3   :  { %1416 = vmatpush.bf16.msra.mxu1 %v1821_v27  ;;  %v2041_v49 = vor.u32 %v2293_v7, %v2040_v40  ;;  %v2045_v27 = vor.u32 %v2291_v25, %v2042_v26  ;;  %1527 = vmatpush.bf16.msrb.mxu0 %v2325_v56 }
  0xf4   :  { %1381 = vmatmul.bf16.vlgmr.msra.gmra.mxu2 %v2576_v50  ;;  %1390 = vmatpush.bf16.msra.mxu3 %v2073_v32 }
  0xf5   :  { %1425 = vmatpush.bf16.msrb.mxu2 %v2013_v28  ;;  %v2287_v28 = vld [vmem:[#allocation4 + $0x30c] sm:$0xf] }
  0xf6   :  { %v2029_v29 = vor.u32 %v2287_v28, %v2026_v54 }
  0xf7   :  { %1417 = vmatpush.bf16.msra.mxu1 %v1805_v63  ;;  %1528 = vmatpush.bf16.msrb.mxu0 %v2324_v57 }
  0xf8   :  { %1391 = vmatpush.bf16.msra.mxu3 %v2057_v9 }
  0xf9   :  { %1426 = vmatpush.bf16.msrb.mxu2 %v1997_v34 }
  0xfb   :  { %1418 = vmatpush.bf16.msra.mxu1 %v1789_v41 }
  0xfc   :  { %1392 = vmatpush.bf16.msra.mxu3 %v2041_v49 }
  0xfd   :  { %1427 = vmatpush.bf16.msrb.mxu2 %v1981_v42 }
  0xff   :  { %1419 = vmatpush.bf16.msra.mxu1 %v1773_v53 }
 0x100   :  { %1393 = vmatpush.bf16.msra.mxu3 %v2025_v60 }
 0x101   :  { %1428 = vmatpush.bf16.msrb.mxu2 %v1965_v55 }
 0x102   :  { %1420 = vmatmul.bf16.vlgmr.msra.gmra.mxu1 %v2567_v61  ;;  %v2093_v61 = vor.u32 %v2303_v16, %v2090_v17  ;;  %v2319_v17 = vld [vmem:[#allocation7 + $0x8] sm:$0xff] }
 0x103   :  { %1394 = vmatmul.bf16.vlgmr.msra.gmra.mxu3 %v2583_v46 }
 0x104   :  { %1438 = vmatpush.bf16.msrb.mxu3 %v2141_v62  ;;  %v2323_v62 = vld [vmem:[#allocation7 + $0x28] sm:$0xff] }
 0x105   :  { %1429 = vmatpush.bf16.msrb.mxu2 %v1949_v0  ;;  %1529 = vmatpush.bf16.msrb.mxu0 %v2323_v62 }
 0x108   :  { %1439 = vmatpush.bf16.msrb.mxu3 %v2125_v6  ;;  %v2322_v6 = vld [vmem:[#allocation7 + $0x20] sm:$0xff] }
 0x109   :  { %1430 = vmatpush.bf16.msrb.mxu2 %v1933_v8  ;;  %1530 = vmatpush.bf16.msrb.mxu0 %v2322_v6 }
 0x10c   :  { %1440 = vmatpush.bf16.msrb.mxu3 %v2109_v14  ;;  %v2320_v14 = vld [vmem:[#allocation7 + $0x10] sm:$0xff] }
 0x10d   :  { %1431 = vmatpush.bf16.msrb.mxu2 %v1917_v15  ;;  %1531 = vmatpush.bf16.msrb.mxu0 %v2321_v10 }
 0x110   :  { %1441 = vmatpush.bf16.msrb.mxu3 %v2093_v61 }
 0x111   :  { %1432 = vmatpush.bf16.msrb.mxu2 %v1901_v38  ;;  %1532 = vmatpush.bf16.msrb.mxu0 %v2320_v14  ;;  %v597_v38 = vperm.slane %v2595_v31, 2  ;;  %v2335_v31 = vld [vmem:[%s2613_s6] ss:$0 sm:$0xff] }
 0x114   :  { %1433 = vmatmul.bf16.vlgmr.msrb.gmra.mxu2 %v2576_v50  ;;  %1442 = vmatpush.bf16.msrb.mxu3 %v2077_v21 }
 0x115   :  { %1533 = vmatpush.bf16.msrb.mxu0 %v2319_v17 }
 0x118   :  { %1443 = vmatpush.bf16.msrb.mxu3 %v2061_v24 }
 0x119   :  { %1534 = vmatpush.bf16.msrb.mxu0 %v2318_v18 }
 0x11c   :  { %1444 = vmatpush.bf16.msrb.mxu3 %v2045_v27 }
 0x120   :  { %1445 = vmatpush.bf16.msrb.mxu3 %v2029_v29 }
 0x123   :  { %1446 = vmatmul.bf16.vlgmr.msrb.gmra.mxu3 %v2583_v46 }
 0x12f   :  { %v1252_v30 = vpop.f32.mrf.mxu0 }
 0x130   :  { %v1253_v50 = vadd.f32 %v1252_v30, %v595_v2 }
 0x137   :  { %v1254_v32 = vpop.f32.mrf.mxu0 }
 0x13f   :  { %v1265_v33 = vpop.f32.mrf.mxu1  ;;  %v1304_v63 = vpop.f32.mrf.mxu0 }
 0x140   :  { %v1266_v34 = vadd.f32 %v1265_v33, %v1253_v50  ;;  %v1305_v39 = vadd.f32 %v1304_v63, %v596_v37 }
 0x147   :  { %v1267_v35 = vpop.f32.mrf.mxu1  ;;  %v1306_v36 = vpop.f32.mrf.mxu0 }
 0x14f   :  { %v1317_v9 = vpop.f32.mrf.mxu1 }
 0x150   :  { %v1318_v40 = vadd.f32 %v1317_v9, %v1305_v39 }
 0x151   :  { %v1356_v7 = vpop.f32.mrf.mxu0 }
 0x152   :  { %v1357_v44 = vadd.f32 %v1356_v7, %v597_v38 }
 0x155   :  { %v1278_v41 = vpop.f32.mrf.mxu2 }
 0x156   :  { %v1279_v46 = vadd.f32 %v1278_v41, %v1266_v34 }
 0x157   :  { %v1319_v42 = vpop.f32.mrf.mxu1 }
 0x159   :  { %v1358_v43 = vpop.f32.mrf.mxu0 }
 0x15d   :  { %v1280_v45 = vpop.f32.mrf.mxu2 }
 0x161   :  { %v1369_v47 = vpop.f32.mrf.mxu1 }
 0x162   :  { %v1370_v22 = vadd.f32 %v1369_v47, %v1357_v44 }
 0x165   :  { %v1291_v48 = vpop.f32.mrf.mxu3  ;;  %v1330_v49 = vpop.f32.mrf.mxu2 }
 0x166   :  { %v1292_v58 = vadd.f32 %v1291_v48, %v1279_v46  ;;  %v1331_v59 = vadd.f32 %v1330_v49, %v1318_v40 }
 0x168   :  { %v1451_v4 = vmax.f32 %v1292_v58, 0.0 }
 0x169   :  { %v1371_v51 = vpop.f32.mrf.mxu1 }
 0x16d   :  { %v1293_v53 = vpop.f32.mrf.mxu3  ;;  %v1332_v55 = vpop.f32.mrf.mxu2 }
 0x16f   :  { %v1408_v52 = vpop.f32.mrf.mxu0 }
 0x170   :  { %v1409_v23 = vadd.f32 %v1408_v52, %v598_v20 }
 0x175   :  { %v1343_v0 = vpop.f32.mrf.mxu3 }
 0x176   :  { %v1344_v1 = vadd.f32 %v1343_v0, %v1331_v59 }
 0x177   :  { %v1410_v60 = vpop.f32.mrf.mxu0  ;;  %v1382_v3 = vpop.f32.mrf.mxu2 }
 0x178   :  { %v1452_v5 = vmax.f32 %v1344_v1, 0.0  ;;  %v1383_v24 = vadd.f32 %v1382_v3, %v1370_v22 }
 0x17a   :  { %v1455_v8 = vmax.f32 %v1451_v4, %v1452_v5 }
 0x17d   :  { %v1345_v12 = vpop.f32.mrf.mxu3 }
 0x17f   :  { %v1421_v11 = vpop.f32.mrf.mxu1  ;;  %v1384_v13 = vpop.f32.mrf.mxu2 }
 0x180   :  { %v1422_v25 = vadd.f32 %v1421_v11, %v1409_v23 }
 0x186   :  { %v1395_v16 = vpop.f32.mrf.mxu3 }
 0x187   :  { %v1423_v15 = vpop.f32.mrf.mxu1  ;;  %v1396_v26 = vadd.f32 %v1395_v16, %v1383_v24 }
 0x189   :  { %v1453_v29 = vmax.f32 %v1396_v26, 0.0 }
 0x18e   :  { %v1397_v19 = vpop.f32.mrf.mxu3 }
 0x197   :  { %v1434_v61 = vpop.f32.mrf.mxu2 }
 0x198   :  { %v1435_v27 = vadd.f32 %v1434_v61, %v1422_v25 }
 0x19f   :  { %v1436_v21 = vpop.f32.mrf.mxu2 }
 0x1a6   :  { %v1447_v28 = vpop.f32.mrf.mxu3 }
 0x1a7   :  { %v1448_v54 = vadd.f32 %v1447_v28, %v1435_v27 }
 0x1a9   :  { %v1454_v30 = vmax.f32 %v1448_v54, 0.0 }
 0x1ab   :  { %v1456_v32 = vmax.f32 %v1453_v29, %v1454_v30 }
 0x1ad   :  { %v1457_v2 = vmax.f32 %v1455_v8, %v1456_v32 }
 0x1ae   :  { %v1449_v50 = vpop.f32.mrf.mxu3 }
 0x1af   :  { %v1458_v33 = vpack.c.bf16 %v1457_v2, %v1457_v2 }
 0x1b1   :  { %1535 = vmatmul.bf16.vlgmr.msrb.gmra.mxu0 %v1458_v33 }
 0x22e   :  { %v1536_v63 = vpop.f32.mrf.mxu0 }
 0x22f   :  { %v1537_v34 = vadd.f32 %v2335_v31, %v1536_v63 }
 0x231   :  { %v1541_v35 = vsel %vm1540_vm1, %v1537_v34, 0.0 }
 0x232   :  { %1542 = vst [vmem:[%s2614_s7] sm:$0xff] %v1541_v35 }
 0x236   :  { %v1538_v36 = vpop.f32.mrf.mxu0 }
 0x237   :  { %1547 = vsyncpa [#allocation3], 1 }
 0x238   :  { %1548 = vsyncpa [#allocation5], 1 }
 0x239   :  { %1549 = vsyncpa [#allocation8], 1 }

</bundles_post_ra>
